<compile_context>
chip_gen: v5e
topology: v5e:2x2
jax: 0.10.0
libtpu: 0.0.40
codegen_flags: <defaults>
</compile_context>

<pallas_src>
import math
import functools

import jax
import jax.numpy as jnp
from jax.experimental import pallas as pl
from jax.experimental.pallas import tpu as pltpu  # noqa: F401  (kept for TPU-specific extensions)

# ----------------------- model config (small, consistent with the module) -----------------------
VOCAB = 50
HIDDEN = 32
N_LAYERS = 2
N_HEADS = 4
HEAD_DIM = HIDDEN // N_HEADS
FF_DIM = 4 * HIDDEN
MAX_LEN = 16
BATCH = 2
SEQ = 8
LN_EPS = 1e-5  # nn.LayerNorm default


# ----------------------------------- fused Pallas kernel -----------------------------------
def _bert4rec_kernel(h_ref, mask_ref,
                     ln1g_ref, ln1b_ref, wqkv_ref, bqkv_ref, wo_ref, bo_ref,
                     ln2g_ref, ln2b_ref, w1_ref, b1_ref, w2_ref, b2_ref,
                     cw1_ref, cb1_ref, cw2_ref, cb2_ref,
                     o_ref, *, batch, seq, n_layers, n_heads, head_dim):
    hidden = n_heads * head_dim
    scale = 1.0 / math.sqrt(head_dim)

    flat = h_ref[...]                     # (B*S, H) f32 activation, stays resident
    # mask_ref: (B, S), 1.0 = valid key, 0.0 = padding

    def layernorm(x, g, b):               # g, b: (1, H)
        mu = jnp.mean(x, axis=-1, keepdims=True)
        var = jnp.mean(jnp.square(x - mu), axis=-1, keepdims=True)
        return (x - mu) * jax.lax.rsqrt(var + LN_EPS) * g + b

    def softmax_rows(s):
        s = s - jnp.max(s, axis=-1, keepdims=True)
        p = jnp.exp(s)                     # EUP
        denom = jnp.sum(p, axis=-1, keepdims=True)
        return p * pl.reciprocal(denom, approx=True)   # EUP reciprocal, not a VALU divide

    for l in range(n_layers):
        # ---------- self-attention sublayer (pre-norm, residual) ----------
        hn = layernorm(flat, ln1g_ref[l:l + 1, :], ln1b_ref[l:l + 1, :])
        qkv = (jnp.dot(hn, wqkv_ref[l], preferred_element_type=jnp.float32)
               + bqkv_ref[l:l + 1, :])                       # (B*S, 3H), one fused QKV matmul

        batch_rows = []
        for b in range(batch):                               # static loops: fully unrolled
            r0 = b * seq
            m_b = mask_ref[b:b + 1, :]                       # (1, S)
            head_outs = []
            for hd in range(n_heads):
                c0 = hd * head_dim
                q = qkv[r0:r0 + seq, c0:c0 + head_dim]                       # (S, Dh)
                k = qkv[r0:r0 + seq, hidden + c0:hidden + c0 + head_dim]     # (S, Dh)
                v = qkv[r0:r0 + seq, 2 * hidden + c0:2 * hidden + c0 + head_dim]
                s = jax.lax.dot_general(q, k, (((1,), (1,)), ((), ())),
                                        preferred_element_type=jnp.float32) * scale
                s = jnp.where(m_b == 0.0, jnp.float32(-1e9), s)              # masked_fill
                p = softmax_rows(s)
                head_outs.append(jnp.dot(p, v, preferred_element_type=jnp.float32))
            # heads laid out lane-contiguously -> merge_heads is a free concat, no transpose
            batch_rows.append(jnp.concatenate(head_outs, axis=-1))           # (S, H)
        attn = jnp.concatenate(batch_rows, axis=0)                           # (B*S, H)
        attn = (jnp.dot(attn, wo_ref[l], preferred_element_type=jnp.float32)
                + bo_ref[l:l + 1, :])
        flat = flat + attn                                                   # fused residual

        # ---------- feed-forward sublayer (pre-norm, residual) ----------
        hn = layernorm(flat, ln2g_ref[l:l + 1, :], ln2b_ref[l:l + 1, :])
        f = (jnp.dot(hn, w1_ref[l], preferred_element_type=jnp.float32)
             + b1_ref[l:l + 1, :])
        # TODO(synk): PyTorch nn.GELU default is erf-exact; tanh approximation used for robust TPU lowering.
        f = jax.nn.gelu(f, approximate=True)
        f = (jnp.dot(f, w2_ref[l], preferred_element_type=jnp.float32)
             + b2_ref[l:l + 1, :])
        flat = flat + f                                                      # fused residual

    # ---------- last-position readout + cls_head (Linear -> GELU -> Linear) ----------
    last = jnp.concatenate(
        [flat[b * seq + seq - 1: b * seq + seq, :] for b in range(batch)], axis=0)  # (B, H)
    z = jnp.dot(last, cw1_ref[...], preferred_element_type=jnp.float32) + cb1_ref[...]
    z = jax.nn.gelu(z, approximate=True)
    z = jnp.dot(z, cw2_ref[...], preferred_element_type=jnp.float32) + cb2_ref[...]
    o_ref[...] = z


# ----------------------------------- forward pass -----------------------------------
def bert4rec_forward(params, x):
    B, S = x.shape
    # embeddings (data-dependent gather stays as plain-JAX glue)
    h0 = params["tok_emb"][x] + params["pos_emb"][:S][None, :, :]      # (B, S, H)
    h0 = h0.reshape(B * S, HIDDEN).astype(jnp.float32)
    mask = (x > 0).astype(jnp.float32)                                  # (B, S)

    kernel = functools.partial(
        _bert4rec_kernel,
        batch=B, seq=S, n_layers=N_LAYERS, n_heads=N_HEADS, head_dim=HEAD_DIM)

    # Single fused call, no grid: every (tiny) input is mapped whole into VMEM and stays
    # resident across the full forward (activations + all weights ~62 KB << VMEM on any TPU gen).
    return pl.pallas_call(
        kernel,
        out_shape=jax.ShapeDtypeStruct((B, HIDDEN), jnp.float32),
    )(h0, mask,
      params["ln1_g"], params["ln1_b"], params["wqkv"], params["bqkv"],
      params["wo"], params["bo"], params["ln2_g"], params["ln2_b"],
      params["w1"], params["b1"], params["w2"], params["b2"],
      params["cls_w1"], params["cls_b1"], params["cls_w2"], params["cls_b2"])


# ----------------------------------- parameter init -----------------------------------
def init_params(key):
    def nxt():
        nonlocal key
        key, sub = jax.random.split(key)
        return sub

    def dense(shape, scale=0.02):
        return (scale * jax.random.normal(nxt(), shape)).astype(jnp.float32)

    L = N_LAYERS
    return {
        "tok_emb": dense((VOCAB, HIDDEN)),
        "pos_emb": dense((MAX_LEN, HIDDEN)),
        # per-layer weights stacked on a leading layer axis (kept VMEM-resident in the fused kernel)
        "ln1_g": jnp.ones((L, HIDDEN), jnp.float32),
        "ln1_b": jnp.zeros((L, HIDDEN), jnp.float32),
        "wqkv": dense((L, HIDDEN, 3 * HIDDEN)),          # [Wq | Wk | Wv] fused
        "bqkv": jnp.zeros((L, 3 * HIDDEN), jnp.float32),
        "wo": dense((L, HIDDEN, HIDDEN)),
        "bo": jnp.zeros((L, HIDDEN), jnp.float32),
        "ln2_g": jnp.ones((L, HIDDEN), jnp.float32),
        "ln2_b": jnp.zeros((L, HIDDEN), jnp.float32),
        "w1": dense((L, HIDDEN, FF_DIM)),
        "b1": jnp.zeros((L, FF_DIM), jnp.float32),
        "w2": dense((L, FF_DIM, HIDDEN)),
        "b2": jnp.zeros((L, HIDDEN), jnp.float32),
        # cls head
        "cls_w1": dense((HIDDEN, HIDDEN)),
        "cls_b1": jnp.zeros((1, HIDDEN), jnp.float32),
        "cls_w2": dense((HIDDEN, HIDDEN)),
        "cls_b2": jnp.zeros((1, HIDDEN), jnp.float32),
    }


if __name__ == "__main__":
    key = jax.random.PRNGKey(0)
    pkey, xkey = jax.random.split(key)
    params = init_params(pkey)
    # token ids in [1, VOCAB): no padding positions
    x = jax.random.randint(xkey, (BATCH, SEQ), minval=1, maxval=VOCAB, dtype=jnp.int32)

    out = jax.jit(bert4rec_forward)(params, x)
    out = jax.block_until_ready(out)
    assert out.shape == (BATCH, HIDDEN)
    assert jnp.all(jnp.isfinite(out))
    print("KERNEL_OK")
</pallas_src>

<mosaic_0001>
module attributes {stable_mosaic.version = 11 : i64} {
  func.func @_bert4rec_kernel(%arg0: memref<16x32xf32, #tpu.memory_space<vmem>>, %arg1: memref<2x8xf32, #tpu.memory_space<vmem>>, %arg2: memref<2x32xf32, #tpu.memory_space<vmem>>, %arg3: memref<2x32xf32, #tpu.memory_space<vmem>>, %arg4: memref<2x32x96xf32, #tpu.memory_space<vmem>>, %arg5: memref<2x96xf32, #tpu.memory_space<vmem>>, %arg6: memref<2x32x32xf32, #tpu.memory_space<vmem>>, %arg7: memref<2x32xf32, #tpu.memory_space<vmem>>, %arg8: memref<2x32xf32, #tpu.memory_space<vmem>>, %arg9: memref<2x32xf32, #tpu.memory_space<vmem>>, %arg10: memref<2x32x128xf32, #tpu.memory_space<vmem>>, %arg11: memref<2x128xf32, #tpu.memory_space<vmem>>, %arg12: memref<2x128x32xf32, #tpu.memory_space<vmem>>, %arg13: memref<2x32xf32, #tpu.memory_space<vmem>>, %arg14: memref<32x32xf32, #tpu.memory_space<vmem>>, %arg15: memref<1x32xf32, #tpu.memory_space<vmem>>, %arg16: memref<32x32xf32, #tpu.memory_space<vmem>>, %arg17: memref<1x32xf32, #tpu.memory_space<vmem>>, %arg18: memref<2x32xf32, #tpu.memory_space<vmem>>) attributes {dimension_semantics = [], scalar_prefetch = 0 : i64, scratch_operands = 0 : i64, tpu.core_type = #tpu.core_type<tc>} {
    %c0 = arith.constant 0 : index
    %c0_0 = arith.constant 0 : index
    %0 = vector.load %arg0[%c0, %c0_0] : memref<16x32xf32, #tpu.memory_space<vmem>>, vector<16x32xf32>
    %c0_1 = arith.constant 0 : index
    %c0_2 = arith.constant 0 : index
    %1 = vector.load %arg2[%c0_1, %c0_2] : memref<2x32xf32, #tpu.memory_space<vmem>>, vector<1x32xf32>
    %c0_3 = arith.constant 0 : index
    %c0_4 = arith.constant 0 : index
    %2 = vector.load %arg3[%c0_3, %c0_4] : memref<2x32xf32, #tpu.memory_space<vmem>>, vector<1x32xf32>
    %cst = arith.constant dense<0.000000e+00> : vector<16xf32>
    %3 = vector.multi_reduction <add>, %0, %cst [1] : vector<16x32xf32> to vector<16xf32>
    %4 = vector.shape_cast %3 : vector<16xf32> to vector<16x1xf32>
    %cst_5 = arith.constant 3.200000e+01 : f32
    %5 = vector.broadcast %cst_5 : f32 to vector<16x1xf32>
    %6 = arith.divf %4, %5 : vector<16x1xf32>
    %7 = vector.broadcast %6 : vector<16x1xf32> to vector<16x32xf32>
    %8 = arith.subf %0, %7 : vector<16x32xf32>
    %9 = arith.mulf %8, %8 : vector<16x32xf32>
    %cst_6 = arith.constant dense<0.000000e+00> : vector<16xf32>
    %10 = vector.multi_reduction <add>, %9, %cst_6 [1] : vector<16x32xf32> to vector<16xf32>
    %11 = vector.shape_cast %10 : vector<16xf32> to vector<16x1xf32>
    %cst_7 = arith.constant 3.200000e+01 : f32
    %12 = vector.broadcast %cst_7 : f32 to vector<16x1xf32>
    %13 = arith.divf %11, %12 : vector<16x1xf32>
    %14 = vector.broadcast %6 : vector<16x1xf32> to vector<16x32xf32>
    %15 = arith.subf %0, %14 : vector<16x32xf32>
    %cst_8 = arith.constant 9.99999974E-6 : f32
    %16 = vector.broadcast %cst_8 : f32 to vector<16x1xf32>
    %17 = arith.addf %13, %16 : vector<16x1xf32>
    %18 = math.rsqrt %17 : vector<16x1xf32>
    %19 = vector.broadcast %18 : vector<16x1xf32> to vector<16x32xf32>
    %20 = arith.mulf %15, %19 : vector<16x32xf32>
    %21 = vector.broadcast %1 : vector<1x32xf32> to vector<16x32xf32>
    %22 = arith.mulf %20, %21 : vector<16x32xf32>
    %23 = vector.broadcast %2 : vector<1x32xf32> to vector<16x32xf32>
    %24 = arith.addf %22, %23 : vector<16x32xf32>
    %c0_9 = arith.constant 0 : index
    %c0_10 = arith.constant 0 : index
    %c0_11 = arith.constant 0 : index
    %25 = vector.load %arg4[%c0_9, %c0_10, %c0_11] : memref<2x32x96xf32, #tpu.memory_space<vmem>>, vector<1x32x96xf32>
    %26 = vector.shape_cast %25 : vector<1x32x96xf32> to vector<32x96xf32>
    %cst_12 = arith.constant dense<0.000000e+00> : vector<16x96xf32>
    %27 = tpu.matmul %24, %26, %cst_12 {dimension_numbers = #tpu.dot_dimension_numbers<[1], [0], [0], [1], [0, 0, 1, 1], [], []>} : vector<16x32xf32>, vector<32x96xf32>, vector<16x96xf32> -> vector<16x96xf32>
    %c0_13 = arith.constant 0 : index
    %c0_14 = arith.constant 0 : index
    %28 = vector.load %arg5[%c0_13, %c0_14] : memref<2x96xf32, #tpu.memory_space<vmem>>, vector<1x96xf32>
    %29 = vector.broadcast %28 : vector<1x96xf32> to vector<16x96xf32>
    %30 = arith.addf %27, %29 : vector<16x96xf32>
    %c0_15 = arith.constant 0 : index
    %c0_16 = arith.constant 0 : index
    %31 = vector.load %arg1[%c0_15, %c0_16] : memref<2x8xf32, #tpu.memory_space<vmem>>, vector<1x8xf32>
    %32 = vector.extract_strided_slice %30 {offsets = [0, 0], sizes = [8, 8], strides = [1, 1]} : vector<16x96xf32> to vector<8x8xf32>
    %33 = vector.extract_strided_slice %30 {offsets = [0, 32], sizes = [8, 8], strides = [1, 1]} : vector<16x96xf32> to vector<8x8xf32>
    %34 = vector.extract_strided_slice %30 {offsets = [0, 64], sizes = [8, 8], strides = [1, 1]} : vector<16x96xf32> to vector<8x8xf32>
    %cst_17 = arith.constant dense<0.000000e+00> : vector<8x8xf32>
    %35 = tpu.matmul %32, %33, %cst_17 {dimension_numbers = #tpu.dot_dimension_numbers<[1], [1], [0], [0], [0, 0, 1, 0], [], []>} : vector<8x8xf32>, vector<8x8xf32>, vector<8x8xf32> -> vector<8x8xf32>
    %cst_18 = arith.constant 0.353553385 : f32
    %36 = vector.broadcast %cst_18 : f32 to vector<8x8xf32>
    %37 = arith.mulf %35, %36 : vector<8x8xf32>
    %cst_19 = arith.constant 0.000000e+00 : f32
    %38 = vector.broadcast %cst_19 : f32 to vector<1x8xf32>
    %39 = arith.cmpf oeq, %31, %38 : vector<1x8xf32>
    %cst_20 = arith.constant -1.000000e+09 : f32
    %40 = vector.shape_cast %39 : vector<1x8xi1> to vector<1x8xi1>
    %41 = vector.broadcast %40 : vector<1x8xi1> to vector<8x8xi1>
    %42 = vector.broadcast %cst_20 : f32 to vector<8x8xf32>
    %43 = arith.select %41, %42, %37 : vector<8x8xi1>, vector<8x8xf32>
    %cst_21 = arith.constant dense<0xFF800000> : vector<8xf32>
    %44 = vector.multi_reduction <maximumf>, %43, %cst_21 [1] : vector<8x8xf32> to vector<8xf32>
    %45 = vector.shape_cast %44 : vector<8xf32> to vector<8x1xf32>
    %46 = vector.broadcast %45 : vector<8x1xf32> to vector<8x8xf32>
    %47 = arith.subf %43, %46 : vector<8x8xf32>
    %48 = math.exp %47 : vector<8x8xf32>
    %cst_22 = arith.constant dense<0.000000e+00> : vector<8xf32>
    %49 = vector.multi_reduction <add>, %48, %cst_22 [1] : vector<8x8xf32> to vector<8xf32>
    %50 = vector.shape_cast %49 : vector<8xf32> to vector<8x1xf32>
    %51 = tpu.reciprocal %50 {approx = true} : vector<8x1xf32> -> vector<8x1xf32>
    %52 = vector.broadcast %51 : vector<8x1xf32> to vector<8x8xf32>
    %53 = arith.mulf %48, %52 : vector<8x8xf32>
    %cst_23 = arith.constant dense<0.000000e+00> : vector<8x8xf32>
    %54 = tpu.matmul %53, %34, %cst_23 {dimension_numbers = #tpu.dot_dimension_numbers<[1], [0], [0], [1], [0, 0, 1, 1], [], []>} : vector<8x8xf32>, vector<8x8xf32>, vector<8x8xf32> -> vector<8x8xf32>
    %55 = vector.extract_strided_slice %30 {offsets = [0, 8], sizes = [8, 8], strides = [1, 1]} : vector<16x96xf32> to vector<8x8xf32>
    %56 = vector.extract_strided_slice %30 {offsets = [0, 40], sizes = [8, 8], strides = [1, 1]} : vector<16x96xf32> to vector<8x8xf32>
    %57 = vector.extract_strided_slice %30 {offsets = [0, 72], sizes = [8, 8], strides = [1, 1]} : vector<16x96xf32> to vector<8x8xf32>
    %cst_24 = arith.constant dense<0.000000e+00> : vector<8x8xf32>
    %58 = tpu.matmul %55, %56, %cst_24 {dimension_numbers = #tpu.dot_dimension_numbers<[1], [1], [0], [0], [0, 0, 1, 0], [], []>} : vector<8x8xf32>, vector<8x8xf32>, vector<8x8xf32> -> vector<8x8xf32>
    %cst_25 = arith.constant 0.353553385 : f32
    %59 = vector.broadcast %cst_25 : f32 to vector<8x8xf32>
    %60 = arith.mulf %58, %59 : vector<8x8xf32>
    %cst_26 = arith.constant 0.000000e+00 : f32
    %61 = vector.broadcast %cst_26 : f32 to vector<1x8xf32>
    %62 = arith.cmpf oeq, %31, %61 : vector<1x8xf32>
    %cst_27 = arith.constant -1.000000e+09 : f32
    %63 = vector.shape_cast %62 : vector<1x8xi1> to vector<1x8xi1>
    %64 = vector.broadcast %63 : vector<1x8xi1> to vector<8x8xi1>
    %65 = vector.broadcast %cst_27 : f32 to vector<8x8xf32>
    %66 = arith.select %64, %65, %60 : vector<8x8xi1>, vector<8x8xf32>
    %cst_28 = arith.constant dense<0xFF800000> : vector<8xf32>
    %67 = vector.multi_reduction <maximumf>, %66, %cst_28 [1] : vector<8x8xf32> to vector<8xf32>
    %68 = vector.shape_cast %67 : vector<8xf32> to vector<8x1xf32>
    %69 = vector.broadcast %68 : vector<8x1xf32> to vector<8x8xf32>
    %70 = arith.subf %66, %69 : vector<8x8xf32>
    %71 = math.exp %70 : vector<8x8xf32>
    %cst_29 = arith.constant dense<0.000000e+00> : vector<8xf32>
    %72 = vector.multi_reduction <add>, %71, %cst_29 [1] : vector<8x8xf32> to vector<8xf32>
    %73 = vector.shape_cast %72 : vector<8xf32> to vector<8x1xf32>
    %74 = tpu.reciprocal %73 {approx = true} : vector<8x1xf32> -> vector<8x1xf32>
    %75 = vector.broadcast %74 : vector<8x1xf32> to vector<8x8xf32>
    %76 = arith.mulf %71, %75 : vector<8x8xf32>
    %cst_30 = arith.constant dense<0.000000e+00> : vector<8x8xf32>
    %77 = tpu.matmul %76, %57, %cst_30 {dimension_numbers = #tpu.dot_dimension_numbers<[1], [0], [0], [1], [0, 0, 1, 1], [], []>} : vector<8x8xf32>, vector<8x8xf32>, vector<8x8xf32> -> vector<8x8xf32>
    %78 = vector.extract_strided_slice %30 {offsets = [0, 16], sizes = [8, 8], strides = [1, 1]} : vector<16x96xf32> to vector<8x8xf32>
    %79 = vector.extract_strided_slice %30 {offsets = [0, 48], sizes = [8, 8], strides = [1, 1]} : vector<16x96xf32> to vector<8x8xf32>
    %80 = vector.extract_strided_slice %30 {offsets = [0, 80], sizes = [8, 8], strides = [1, 1]} : vector<16x96xf32> to vector<8x8xf32>
    %cst_31 = arith.constant dense<0.000000e+00> : vector<8x8xf32>
    %81 = tpu.matmul %78, %79, %cst_31 {dimension_numbers = #tpu.dot_dimension_numbers<[1], [1], [0], [0], [0, 0, 1, 0], [], []>} : vector<8x8xf32>, vector<8x8xf32>, vector<8x8xf32> -> vector<8x8xf32>
    %cst_32 = arith.constant 0.353553385 : f32
    %82 = vector.broadcast %cst_32 : f32 to vector<8x8xf32>
    %83 = arith.mulf %81, %82 : vector<8x8xf32>
    %cst_33 = arith.constant 0.000000e+00 : f32
    %84 = vector.broadcast %cst_33 : f32 to vector<1x8xf32>
    %85 = arith.cmpf oeq, %31, %84 : vector<1x8xf32>
    %cst_34 = arith.constant -1.000000e+09 : f32
    %86 = vector.shape_cast %85 : vector<1x8xi1> to vector<1x8xi1>
    %87 = vector.broadcast %86 : vector<1x8xi1> to vector<8x8xi1>
    %88 = vector.broadcast %cst_34 : f32 to vector<8x8xf32>
    %89 = arith.select %87, %88, %83 : vector<8x8xi1>, vector<8x8xf32>
    %cst_35 = arith.constant dense<0xFF800000> : vector<8xf32>
    %90 = vector.multi_reduction <maximumf>, %89, %cst_35 [1] : vector<8x8xf32> to vector<8xf32>
    %91 = vector.shape_cast %90 : vector<8xf32> to vector<8x1xf32>
    %92 = vector.broadcast %91 : vector<8x1xf32> to vector<8x8xf32>
    %93 = arith.subf %89, %92 : vector<8x8xf32>
    %94 = math.exp %93 : vector<8x8xf32>
    %cst_36 = arith.constant dense<0.000000e+00> : vector<8xf32>
    %95 = vector.multi_reduction <add>, %94, %cst_36 [1] : vector<8x8xf32> to vector<8xf32>
    %96 = vector.shape_cast %95 : vector<8xf32> to vector<8x1xf32>
    %97 = tpu.reciprocal %96 {approx = true} : vector<8x1xf32> -> vector<8x1xf32>
    %98 = vector.broadcast %97 : vector<8x1xf32> to vector<8x8xf32>
    %99 = arith.mulf %94, %98 : vector<8x8xf32>
    %cst_37 = arith.constant dense<0.000000e+00> : vector<8x8xf32>
    %100 = tpu.matmul %99, %80, %cst_37 {dimension_numbers = #tpu.dot_dimension_numbers<[1], [0], [0], [1], [0, 0, 1, 1], [], []>} : vector<8x8xf32>, vector<8x8xf32>, vector<8x8xf32> -> vector<8x8xf32>
    %101 = vector.extract_strided_slice %30 {offsets = [0, 24], sizes = [8, 8], strides = [1, 1]} : vector<16x96xf32> to vector<8x8xf32>
    %102 = vector.extract_strided_slice %30 {offsets = [0, 56], sizes = [8, 8], strides = [1, 1]} : vector<16x96xf32> to vector<8x8xf32>
    %103 = vector.extract_strided_slice %30 {offsets = [0, 88], sizes = [8, 8], strides = [1, 1]} : vector<16x96xf32> to vector<8x8xf32>
    %cst_38 = arith.constant dense<0.000000e+00> : vector<8x8xf32>
    %104 = tpu.matmul %101, %102, %cst_38 {dimension_numbers = #tpu.dot_dimension_numbers<[1], [1], [0], [0], [0, 0, 1, 0], [], []>} : vector<8x8xf32>, vector<8x8xf32>, vector<8x8xf32> -> vector<8x8xf32>
    %cst_39 = arith.constant 0.353553385 : f32
    %105 = vector.broadcast %cst_39 : f32 to vector<8x8xf32>
    %106 = arith.mulf %104, %105 : vector<8x8xf32>
    %cst_40 = arith.constant 0.000000e+00 : f32
    %107 = vector.broadcast %cst_40 : f32 to vector<1x8xf32>
    %108 = arith.cmpf oeq, %31, %107 : vector<1x8xf32>
    %cst_41 = arith.constant -1.000000e+09 : f32
    %109 = vector.shape_cast %108 : vector<1x8xi1> to vector<1x8xi1>
    %110 = vector.broadcast %109 : vector<1x8xi1> to vector<8x8xi1>
    %111 = vector.broadcast %cst_41 : f32 to vector<8x8xf32>
    %112 = arith.select %110, %111, %106 : vector<8x8xi1>, vector<8x8xf32>
    %cst_42 = arith.constant dense<0xFF800000> : vector<8xf32>
    %113 = vector.multi_reduction <maximumf>, %112, %cst_42 [1] : vector<8x8xf32> to vector<8xf32>
    %114 = vector.shape_cast %113 : vector<8xf32> to vector<8x1xf32>
    %115 = vector.broadcast %114 : vector<8x1xf32> to vector<8x8xf32>
    %116 = arith.subf %112, %115 : vector<8x8xf32>
    %117 = math.exp %116 : vector<8x8xf32>
    %cst_43 = arith.constant dense<0.000000e+00> : vector<8xf32>
    %118 = vector.multi_reduction <add>, %117, %cst_43 [1] : vector<8x8xf32> to vector<8xf32>
    %119 = vector.shape_cast %118 : vector<8xf32> to vector<8x1xf32>
    %120 = tpu.reciprocal %119 {approx = true} : vector<8x1xf32> -> vector<8x1xf32>
    %121 = vector.broadcast %120 : vector<8x1xf32> to vector<8x8xf32>
    %122 = arith.mulf %117, %121 : vector<8x8xf32>
    %cst_44 = arith.constant dense<0.000000e+00> : vector<8x8xf32>
    %123 = tpu.matmul %122, %103, %cst_44 {dimension_numbers = #tpu.dot_dimension_numbers<[1], [0], [0], [1], [0, 0, 1, 1], [], []>} : vector<8x8xf32>, vector<8x8xf32>, vector<8x8xf32> -> vector<8x8xf32>
    %124 = tpu.concatenate %54, %77, %100, %123 in 1 : vector<8x8xf32>, vector<8x8xf32>, vector<8x8xf32>, vector<8x8xf32> -> vector<8x32xf32>
    %c1 = arith.constant 1 : index
    %c0_45 = arith.constant 0 : index
    %125 = vector.load %arg1[%c1, %c0_45] : memref<2x8xf32, #tpu.memory_space<vmem>>, vector<1x8xf32>
    %126 = vector.extract_strided_slice %30 {offsets = [8, 0], sizes = [8, 8], strides = [1, 1]} : vector<16x96xf32> to vector<8x8xf32>
    %127 = vector.extract_strided_slice %30 {offsets = [8, 32], sizes = [8, 8], strides = [1, 1]} : vector<16x96xf32> to vector<8x8xf32>
    %128 = vector.extract_strided_slice %30 {offsets = [8, 64], sizes = [8, 8], strides = [1, 1]} : vector<16x96xf32> to vector<8x8xf32>
    %cst_46 = arith.constant dense<0.000000e+00> : vector<8x8xf32>
    %129 = tpu.matmul %126, %127, %cst_46 {dimension_numbers = #tpu.dot_dimension_numbers<[1], [1], [0], [0], [0, 0, 1, 0], [], []>} : vector<8x8xf32>, vector<8x8xf32>, vector<8x8xf32> -> vector<8x8xf32>
    %cst_47 = arith.constant 0.353553385 : f32
    %130 = vector.broadcast %cst_47 : f32 to vector<8x8xf32>
    %131 = arith.mulf %129, %130 : vector<8x8xf32>
    %cst_48 = arith.constant 0.000000e+00 : f32
    %132 = vector.broadcast %cst_48 : f32 to vector<1x8xf32>
    %133 = arith.cmpf oeq, %125, %132 : vector<1x8xf32>
    %cst_49 = arith.constant -1.000000e+09 : f32
    %134 = vector.shape_cast %133 : vector<1x8xi1> to vector<1x8xi1>
    %135 = vector.broadcast %134 : vector<1x8xi1> to vector<8x8xi1>
    %136 = vector.broadcast %cst_49 : f32 to vector<8x8xf32>
    %137 = arith.select %135, %136, %131 : vector<8x8xi1>, vector<8x8xf32>
    %cst_50 = arith.constant dense<0xFF800000> : vector<8xf32>
    %138 = vector.multi_reduction <maximumf>, %137, %cst_50 [1] : vector<8x8xf32> to vector<8xf32>
    %139 = vector.shape_cast %138 : vector<8xf32> to vector<8x1xf32>
    %140 = vector.broadcast %139 : vector<8x1xf32> to vector<8x8xf32>
    %141 = arith.subf %137, %140 : vector<8x8xf32>
    %142 = math.exp %141 : vector<8x8xf32>
    %cst_51 = arith.constant dense<0.000000e+00> : vector<8xf32>
    %143 = vector.multi_reduction <add>, %142, %cst_51 [1] : vector<8x8xf32> to vector<8xf32>
    %144 = vector.shape_cast %143 : vector<8xf32> to vector<8x1xf32>
    %145 = tpu.reciprocal %144 {approx = true} : vector<8x1xf32> -> vector<8x1xf32>
    %146 = vector.broadcast %145 : vector<8x1xf32> to vector<8x8xf32>
    %147 = arith.mulf %142, %146 : vector<8x8xf32>
    %cst_52 = arith.constant dense<0.000000e+00> : vector<8x8xf32>
    %148 = tpu.matmul %147, %128, %cst_52 {dimension_numbers = #tpu.dot_dimension_numbers<[1], [0], [0], [1], [0, 0, 1, 1], [], []>} : vector<8x8xf32>, vector<8x8xf32>, vector<8x8xf32> -> vector<8x8xf32>
    %149 = vector.extract_strided_slice %30 {offsets = [8, 8], sizes = [8, 8], strides = [1, 1]} : vector<16x96xf32> to vector<8x8xf32>
    %150 = vector.extract_strided_slice %30 {offsets = [8, 40], sizes = [8, 8], strides = [1, 1]} : vector<16x96xf32> to vector<8x8xf32>
    %151 = vector.extract_strided_slice %30 {offsets = [8, 72], sizes = [8, 8], strides = [1, 1]} : vector<16x96xf32> to vector<8x8xf32>
    %cst_53 = arith.constant dense<0.000000e+00> : vector<8x8xf32>
    %152 = tpu.matmul %149, %150, %cst_53 {dimension_numbers = #tpu.dot_dimension_numbers<[1], [1], [0], [0], [0, 0, 1, 0], [], []>} : vector<8x8xf32>, vector<8x8xf32>, vector<8x8xf32> -> vector<8x8xf32>
    %cst_54 = arith.constant 0.353553385 : f32
    %153 = vector.broadcast %cst_54 : f32 to vector<8x8xf32>
    %154 = arith.mulf %152, %153 : vector<8x8xf32>
    %cst_55 = arith.constant 0.000000e+00 : f32
    %155 = vector.broadcast %cst_55 : f32 to vector<1x8xf32>
    %156 = arith.cmpf oeq, %125, %155 : vector<1x8xf32>
    %cst_56 = arith.constant -1.000000e+09 : f32
    %157 = vector.shape_cast %156 : vector<1x8xi1> to vector<1x8xi1>
    %158 = vector.broadcast %157 : vector<1x8xi1> to vector<8x8xi1>
    %159 = vector.broadcast %cst_56 : f32 to vector<8x8xf32>
    %160 = arith.select %158, %159, %154 : vector<8x8xi1>, vector<8x8xf32>
    %cst_57 = arith.constant dense<0xFF800000> : vector<8xf32>
    %161 = vector.multi_reduction <maximumf>, %160, %cst_57 [1] : vector<8x8xf32> to vector<8xf32>
    %162 = vector.shape_cast %161 : vector<8xf32> to vector<8x1xf32>
    %163 = vector.broadcast %162 : vector<8x1xf32> to vector<8x8xf32>
    %164 = arith.subf %160, %163 : vector<8x8xf32>
    %165 = math.exp %164 : vector<8x8xf32>
    %cst_58 = arith.constant dense<0.000000e+00> : vector<8xf32>
    %166 = vector.multi_reduction <add>, %165, %cst_58 [1] : vector<8x8xf32> to vector<8xf32>
    %167 = vector.shape_cast %166 : vector<8xf32> to vector<8x1xf32>
    %168 = tpu.reciprocal %167 {approx = true} : vector<8x1xf32> -> vector<8x1xf32>
    %169 = vector.broadcast %168 : vector<8x1xf32> to vector<8x8xf32>
    %170 = arith.mulf %165, %169 : vector<8x8xf32>
    %cst_59 = arith.constant dense<0.000000e+00> : vector<8x8xf32>
    %171 = tpu.matmul %170, %151, %cst_59 {dimension_numbers = #tpu.dot_dimension_numbers<[1], [0], [0], [1], [0, 0, 1, 1], [], []>} : vector<8x8xf32>, vector<8x8xf32>, vector<8x8xf32> -> vector<8x8xf32>
    %172 = vector.extract_strided_slice %30 {offsets = [8, 16], sizes = [8, 8], strides = [1, 1]} : vector<16x96xf32> to vector<8x8xf32>
    %173 = vector.extract_strided_slice %30 {offsets = [8, 48], sizes = [8, 8], strides = [1, 1]} : vector<16x96xf32> to vector<8x8xf32>
    %174 = vector.extract_strided_slice %30 {offsets = [8, 80], sizes = [8, 8], strides = [1, 1]} : vector<16x96xf32> to vector<8x8xf32>
    %cst_60 = arith.constant dense<0.000000e+00> : vector<8x8xf32>
    %175 = tpu.matmul %172, %173, %cst_60 {dimension_numbers = #tpu.dot_dimension_numbers<[1], [1], [0], [0], [0, 0, 1, 0], [], []>} : vector<8x8xf32>, vector<8x8xf32>, vector<8x8xf32> -> vector<8x8xf32>
    %cst_61 = arith.constant 0.353553385 : f32
    %176 = vector.broadcast %cst_61 : f32 to vector<8x8xf32>
    %177 = arith.mulf %175, %176 : vector<8x8xf32>
    %cst_62 = arith.constant 0.000000e+00 : f32
    %178 = vector.broadcast %cst_62 : f32 to vector<1x8xf32>
    %179 = arith.cmpf oeq, %125, %178 : vector<1x8xf32>
    %cst_63 = arith.constant -1.000000e+09 : f32
    %180 = vector.shape_cast %179 : vector<1x8xi1> to vector<1x8xi1>
    %181 = vector.broadcast %180 : vector<1x8xi1> to vector<8x8xi1>
    %182 = vector.broadcast %cst_63 : f32 to vector<8x8xf32>
    %183 = arith.select %181, %182, %177 : vector<8x8xi1>, vector<8x8xf32>
    %cst_64 = arith.constant dense<0xFF800000> : vector<8xf32>
    %184 = vector.multi_reduction <maximumf>, %183, %cst_64 [1] : vector<8x8xf32> to vector<8xf32>
    %185 = vector.shape_cast %184 : vector<8xf32> to vector<8x1xf32>
    %186 = vector.broadcast %185 : vector<8x1xf32> to vector<8x8xf32>
    %187 = arith.subf %183, %186 : vector<8x8xf32>
    %188 = math.exp %187 : vector<8x8xf32>
    %cst_65 = arith.constant dense<0.000000e+00> : vector<8xf32>
    %189 = vector.multi_reduction <add>, %188, %cst_65 [1] : vector<8x8xf32> to vector<8xf32>
    %190 = vector.shape_cast %189 : vector<8xf32> to vector<8x1xf32>
    %191 = tpu.reciprocal %190 {approx = true} : vector<8x1xf32> -> vector<8x1xf32>
    %192 = vector.broadcast %191 : vector<8x1xf32> to vector<8x8xf32>
    %193 = arith.mulf %188, %192 : vector<8x8xf32>
    %cst_66 = arith.constant dense<0.000000e+00> : vector<8x8xf32>
    %194 = tpu.matmul %193, %174, %cst_66 {dimension_numbers = #tpu.dot_dimension_numbers<[1], [0], [0], [1], [0, 0, 1, 1], [], []>} : vector<8x8xf32>, vector<8x8xf32>, vector<8x8xf32> -> vector<8x8xf32>
    %195 = vector.extract_strided_slice %30 {offsets = [8, 24], sizes = [8, 8], strides = [1, 1]} : vector<16x96xf32> to vector<8x8xf32>
    %196 = vector.extract_strided_slice %30 {offsets = [8, 56], sizes = [8, 8], strides = [1, 1]} : vector<16x96xf32> to vector<8x8xf32>
    %197 = vector.extract_strided_slice %30 {offsets = [8, 88], sizes = [8, 8], strides = [1, 1]} : vector<16x96xf32> to vector<8x8xf32>
    %cst_67 = arith.constant dense<0.000000e+00> : vector<8x8xf32>
    %198 = tpu.matmul %195, %196, %cst_67 {dimension_numbers = #tpu.dot_dimension_numbers<[1], [1], [0], [0], [0, 0, 1, 0], [], []>} : vector<8x8xf32>, vector<8x8xf32>, vector<8x8xf32> -> vector<8x8xf32>
    %cst_68 = arith.constant 0.353553385 : f32
    %199 = vector.broadcast %cst_68 : f32 to vector<8x8xf32>
    %200 = arith.mulf %198, %199 : vector<8x8xf32>
    %cst_69 = arith.constant 0.000000e+00 : f32
    %201 = vector.broadcast %cst_69 : f32 to vector<1x8xf32>
    %202 = arith.cmpf oeq, %125, %201 : vector<1x8xf32>
    %cst_70 = arith.constant -1.000000e+09 : f32
    %203 = vector.shape_cast %202 : vector<1x8xi1> to vector<1x8xi1>
    %204 = vector.broadcast %203 : vector<1x8xi1> to vector<8x8xi1>
    %205 = vector.broadcast %cst_70 : f32 to vector<8x8xf32>
    %206 = arith.select %204, %205, %200 : vector<8x8xi1>, vector<8x8xf32>
    %cst_71 = arith.constant dense<0xFF800000> : vector<8xf32>
    %207 = vector.multi_reduction <maximumf>, %206, %cst_71 [1] : vector<8x8xf32> to vector<8xf32>
    %208 = vector.shape_cast %207 : vector<8xf32> to vector<8x1xf32>
    %209 = vector.broadcast %208 : vector<8x1xf32> to vector<8x8xf32>
    %210 = arith.subf %206, %209 : vector<8x8xf32>
    %211 = math.exp %210 : vector<8x8xf32>
    %cst_72 = arith.constant dense<0.000000e+00> : vector<8xf32>
    %212 = vector.multi_reduction <add>, %211, %cst_72 [1] : vector<8x8xf32> to vector<8xf32>
    %213 = vector.shape_cast %212 : vector<8xf32> to vector<8x1xf32>
    %214 = tpu.reciprocal %213 {approx = true} : vector<8x1xf32> -> vector<8x1xf32>
    %215 = vector.broadcast %214 : vector<8x1xf32> to vector<8x8xf32>
    %216 = arith.mulf %211, %215 : vector<8x8xf32>
    %cst_73 = arith.constant dense<0.000000e+00> : vector<8x8xf32>
    %217 = tpu.matmul %216, %197, %cst_73 {dimension_numbers = #tpu.dot_dimension_numbers<[1], [0], [0], [1], [0, 0, 1, 1], [], []>} : vector<8x8xf32>, vector<8x8xf32>, vector<8x8xf32> -> vector<8x8xf32>
    %218 = tpu.concatenate %148, %171, %194, %217 in 1 : vector<8x8xf32>, vector<8x8xf32>, vector<8x8xf32>, vector<8x8xf32> -> vector<8x32xf32>
    %219 = tpu.concatenate %124, %218 in 0 : vector<8x32xf32>, vector<8x32xf32> -> vector<16x32xf32>
    %c0_74 = arith.constant 0 : index
    %c0_75 = arith.constant 0 : index
    %c0_76 = arith.constant 0 : index
    %220 = vector.load %arg6[%c0_74, %c0_75, %c0_76] : memref<2x32x32xf32, #tpu.memory_space<vmem>>, vector<1x32x32xf32>
    %221 = vector.shape_cast %220 : vector<1x32x32xf32> to vector<32x32xf32>
    %cst_77 = arith.constant dense<0.000000e+00> : vector<16x32xf32>
    %222 = tpu.matmul %219, %221, %cst_77 {dimension_numbers = #tpu.dot_dimension_numbers<[1], [0], [0], [1], [0, 0, 1, 1], [], []>} : vector<16x32xf32>, vector<32x32xf32>, vector<16x32xf32> -> vector<16x32xf32>
    %c0_78 = arith.constant 0 : index
    %c0_79 = arith.constant 0 : index
    %223 = vector.load %arg7[%c0_78, %c0_79] : memref<2x32xf32, #tpu.memory_space<vmem>>, vector<1x32xf32>
    %224 = vector.broadcast %223 : vector<1x32xf32> to vector<16x32xf32>
    %225 = arith.addf %222, %224 : vector<16x32xf32>
    %226 = arith.addf %0, %225 : vector<16x32xf32>
    %c0_80 = arith.constant 0 : index
    %c0_81 = arith.constant 0 : index
    %227 = vector.load %arg8[%c0_80, %c0_81] : memref<2x32xf32, #tpu.memory_space<vmem>>, vector<1x32xf32>
    %c0_82 = arith.constant 0 : index
    %c0_83 = arith.constant 0 : index
    %228 = vector.load %arg9[%c0_82, %c0_83] : memref<2x32xf32, #tpu.memory_space<vmem>>, vector<1x32xf32>
    %cst_84 = arith.constant dense<0.000000e+00> : vector<16xf32>
    %229 = vector.multi_reduction <add>, %226, %cst_84 [1] : vector<16x32xf32> to vector<16xf32>
    %230 = vector.shape_cast %229 : vector<16xf32> to vector<16x1xf32>
    %cst_85 = arith.constant 3.200000e+01 : f32
    %231 = vector.broadcast %cst_85 : f32 to vector<16x1xf32>
    %232 = arith.divf %230, %231 : vector<16x1xf32>
    %233 = vector.broadcast %232 : vector<16x1xf32> to vector<16x32xf32>
    %234 = arith.subf %226, %233 : vector<16x32xf32>
    %235 = arith.mulf %234, %234 : vector<16x32xf32>
    %cst_86 = arith.constant dense<0.000000e+00> : vector<16xf32>
    %236 = vector.multi_reduction <add>, %235, %cst_86 [1] : vector<16x32xf32> to vector<16xf32>
    %237 = vector.shape_cast %236 : vector<16xf32> to vector<16x1xf32>
    %cst_87 = arith.constant 3.200000e+01 : f32
    %238 = vector.broadcast %cst_87 : f32 to vector<16x1xf32>
    %239 = arith.divf %237, %238 : vector<16x1xf32>
    %240 = vector.broadcast %232 : vector<16x1xf32> to vector<16x32xf32>
    %241 = arith.subf %226, %240 : vector<16x32xf32>
    %cst_88 = arith.constant 9.99999974E-6 : f32
    %242 = vector.broadcast %cst_88 : f32 to vector<16x1xf32>
    %243 = arith.addf %239, %242 : vector<16x1xf32>
    %244 = math.rsqrt %243 : vector<16x1xf32>
    %245 = vector.broadcast %244 : vector<16x1xf32> to vector<16x32xf32>
    %246 = arith.mulf %241, %245 : vector<16x32xf32>
    %247 = vector.broadcast %227 : vector<1x32xf32> to vector<16x32xf32>
    %248 = arith.mulf %246, %247 : vector<16x32xf32>
    %249 = vector.broadcast %228 : vector<1x32xf32> to vector<16x32xf32>
    %250 = arith.addf %248, %249 : vector<16x32xf32>
    %c0_89 = arith.constant 0 : index
    %c0_90 = arith.constant 0 : index
    %c0_91 = arith.constant 0 : index
    %251 = vector.load %arg10[%c0_89, %c0_90, %c0_91] : memref<2x32x128xf32, #tpu.memory_space<vmem>>, vector<1x32x128xf32>
    %252 = vector.shape_cast %251 : vector<1x32x128xf32> to vector<32x128xf32>
    %cst_92 = arith.constant dense<0.000000e+00> : vector<16x128xf32>
    %253 = tpu.matmul %250, %252, %cst_92 {dimension_numbers = #tpu.dot_dimension_numbers<[1], [0], [0], [1], [0, 0, 1, 1], [], []>} : vector<16x32xf32>, vector<32x128xf32>, vector<16x128xf32> -> vector<16x128xf32>
    %c0_93 = arith.constant 0 : index
    %c0_94 = arith.constant 0 : index
    %254 = vector.load %arg11[%c0_93, %c0_94] : memref<2x128xf32, #tpu.memory_space<vmem>>, vector<1x128xf32>
    %255 = vector.broadcast %254 : vector<1x128xf32> to vector<16x128xf32>
    %256 = arith.addf %253, %255 : vector<16x128xf32>
    %257 = arith.mulf %256, %256 : vector<16x128xf32>
    %258 = arith.mulf %256, %257 : vector<16x128xf32>
    %cst_95 = arith.constant 4.471500e-02 : f32
    %259 = vector.broadcast %cst_95 : f32 to vector<16x128xf32>
    %260 = arith.mulf %259, %258 : vector<16x128xf32>
    %261 = arith.addf %256, %260 : vector<16x128xf32>
    %cst_96 = arith.constant 0.797884583 : f32
    %262 = vector.broadcast %cst_96 : f32 to vector<16x128xf32>
    %263 = arith.mulf %262, %261 : vector<16x128xf32>
    %264 = math.tanh %263 : vector<16x128xf32>
    %cst_97 = arith.constant 1.000000e+00 : f32
    %265 = vector.broadcast %cst_97 : f32 to vector<16x128xf32>
    %266 = arith.addf %265, %264 : vector<16x128xf32>
    %cst_98 = arith.constant 5.000000e-01 : f32
    %267 = vector.broadcast %cst_98 : f32 to vector<16x128xf32>
    %268 = arith.mulf %267, %266 : vector<16x128xf32>
    %269 = arith.mulf %256, %268 : vector<16x128xf32>
    %c0_99 = arith.constant 0 : index
    %c0_100 = arith.constant 0 : index
    %c0_101 = arith.constant 0 : index
    %270 = vector.load %arg12[%c0_99, %c0_100, %c0_101] : memref<2x128x32xf32, #tpu.memory_space<vmem>>, vector<1x128x32xf32>
    %271 = vector.shape_cast %270 : vector<1x128x32xf32> to vector<128x32xf32>
    %cst_102 = arith.constant dense<0.000000e+00> : vector<16x32xf32>
    %272 = tpu.matmul %269, %271, %cst_102 {dimension_numbers = #tpu.dot_dimension_numbers<[1], [0], [0], [1], [0, 0, 1, 1], [], []>} : vector<16x128xf32>, vector<128x32xf32>, vector<16x32xf32> -> vector<16x32xf32>
    %c0_103 = arith.constant 0 : index
    %c0_104 = arith.constant 0 : index
    %273 = vector.load %arg13[%c0_103, %c0_104] : memref<2x32xf32, #tpu.memory_space<vmem>>, vector<1x32xf32>
    %274 = vector.broadcast %273 : vector<1x32xf32> to vector<16x32xf32>
    %275 = arith.addf %272, %274 : vector<16x32xf32>
    %276 = arith.addf %226, %275 : vector<16x32xf32>
    %c1_105 = arith.constant 1 : index
    %c0_106 = arith.constant 0 : index
    %277 = vector.load %arg2[%c1_105, %c0_106] : memref<2x32xf32, #tpu.memory_space<vmem>>, vector<1x32xf32>
    %c1_107 = arith.constant 1 : index
    %c0_108 = arith.constant 0 : index
    %278 = vector.load %arg3[%c1_107, %c0_108] : memref<2x32xf32, #tpu.memory_space<vmem>>, vector<1x32xf32>
    %cst_109 = arith.constant dense<0.000000e+00> : vector<16xf32>
    %279 = vector.multi_reduction <add>, %276, %cst_109 [1] : vector<16x32xf32> to vector<16xf32>
    %280 = vector.shape_cast %279 : vector<16xf32> to vector<16x1xf32>
    %cst_110 = arith.constant 3.200000e+01 : f32
    %281 = vector.broadcast %cst_110 : f32 to vector<16x1xf32>
    %282 = arith.divf %280, %281 : vector<16x1xf32>
    %283 = vector.broadcast %282 : vector<16x1xf32> to vector<16x32xf32>
    %284 = arith.subf %276, %283 : vector<16x32xf32>
    %285 = arith.mulf %284, %284 : vector<16x32xf32>
    %cst_111 = arith.constant dense<0.000000e+00> : vector<16xf32>
    %286 = vector.multi_reduction <add>, %285, %cst_111 [1] : vector<16x32xf32> to vector<16xf32>
    %287 = vector.shape_cast %286 : vector<16xf32> to vector<16x1xf32>
    %cst_112 = arith.constant 3.200000e+01 : f32
    %288 = vector.broadcast %cst_112 : f32 to vector<16x1xf32>
    %289 = arith.divf %287, %288 : vector<16x1xf32>
    %290 = vector.broadcast %282 : vector<16x1xf32> to vector<16x32xf32>
    %291 = arith.subf %276, %290 : vector<16x32xf32>
    %cst_113 = arith.constant 9.99999974E-6 : f32
    %292 = vector.broadcast %cst_113 : f32 to vector<16x1xf32>
    %293 = arith.addf %289, %292 : vector<16x1xf32>
    %294 = math.rsqrt %293 : vector<16x1xf32>
    %295 = vector.broadcast %294 : vector<16x1xf32> to vector<16x32xf32>
    %296 = arith.mulf %291, %295 : vector<16x32xf32>
    %297 = vector.broadcast %277 : vector<1x32xf32> to vector<16x32xf32>
    %298 = arith.mulf %296, %297 : vector<16x32xf32>
    %299 = vector.broadcast %278 : vector<1x32xf32> to vector<16x32xf32>
    %300 = arith.addf %298, %299 : vector<16x32xf32>
    %c1_114 = arith.constant 1 : index
    %c0_115 = arith.constant 0 : index
    %c0_116 = arith.constant 0 : index
    %301 = vector.load %arg4[%c1_114, %c0_115, %c0_116] : memref<2x32x96xf32, #tpu.memory_space<vmem>>, vector<1x32x96xf32>
    %302 = vector.shape_cast %301 : vector<1x32x96xf32> to vector<32x96xf32>
    %cst_117 = arith.constant dense<0.000000e+00> : vector<16x96xf32>
    %303 = tpu.matmul %300, %302, %cst_117 {dimension_numbers = #tpu.dot_dimension_numbers<[1], [0], [0], [1], [0, 0, 1, 1], [], []>} : vector<16x32xf32>, vector<32x96xf32>, vector<16x96xf32> -> vector<16x96xf32>
    %c1_118 = arith.constant 1 : index
    %c0_119 = arith.constant 0 : index
    %304 = vector.load %arg5[%c1_118, %c0_119] : memref<2x96xf32, #tpu.memory_space<vmem>>, vector<1x96xf32>
    %305 = vector.broadcast %304 : vector<1x96xf32> to vector<16x96xf32>
    %306 = arith.addf %303, %305 : vector<16x96xf32>
    %c0_120 = arith.constant 0 : index
    %c0_121 = arith.constant 0 : index
    %307 = vector.load %arg1[%c0_120, %c0_121] : memref<2x8xf32, #tpu.memory_space<vmem>>, vector<1x8xf32>
    %308 = vector.extract_strided_slice %306 {offsets = [0, 0], sizes = [8, 8], strides = [1, 1]} : vector<16x96xf32> to vector<8x8xf32>
    %309 = vector.extract_strided_slice %306 {offsets = [0, 32], sizes = [8, 8], strides = [1, 1]} : vector<16x96xf32> to vector<8x8xf32>
    %310 = vector.extract_strided_slice %306 {offsets = [0, 64], sizes = [8, 8], strides = [1, 1]} : vector<16x96xf32> to vector<8x8xf32>
    %cst_122 = arith.constant dense<0.000000e+00> : vector<8x8xf32>
    %311 = tpu.matmul %308, %309, %cst_122 {dimension_numbers = #tpu.dot_dimension_numbers<[1], [1], [0], [0], [0, 0, 1, 0], [], []>} : vector<8x8xf32>, vector<8x8xf32>, vector<8x8xf32> -> vector<8x8xf32>
    %cst_123 = arith.constant 0.353553385 : f32
    %312 = vector.broadcast %cst_123 : f32 to vector<8x8xf32>
    %313 = arith.mulf %311, %312 : vector<8x8xf32>
    %cst_124 = arith.constant 0.000000e+00 : f32
    %314 = vector.broadcast %cst_124 : f32 to vector<1x8xf32>
    %315 = arith.cmpf oeq, %307, %314 : vector<1x8xf32>
    %cst_125 = arith.constant -1.000000e+09 : f32
    %316 = vector.shape_cast %315 : vector<1x8xi1> to vector<1x8xi1>
    %317 = vector.broadcast %316 : vector<1x8xi1> to vector<8x8xi1>
    %318 = vector.broadcast %cst_125 : f32 to vector<8x8xf32>
    %319 = arith.select %317, %318, %313 : vector<8x8xi1>, vector<8x8xf32>
    %cst_126 = arith.constant dense<0xFF800000> : vector<8xf32>
    %320 = vector.multi_reduction <maximumf>, %319, %cst_126 [1] : vector<8x8xf32> to vector<8xf32>
    %321 = vector.shape_cast %320 : vector<8xf32> to vector<8x1xf32>
    %322 = vector.broadcast %321 : vector<8x1xf32> to vector<8x8xf32>
    %323 = arith.subf %319, %322 : vector<8x8xf32>
    %324 = math.exp %323 : vector<8x8xf32>
    %cst_127 = arith.constant dense<0.000000e+00> : vector<8xf32>
    %325 = vector.multi_reduction <add>, %324, %cst_127 [1] : vector<8x8xf32> to vector<8xf32>
    %326 = vector.shape_cast %325 : vector<8xf32> to vector<8x1xf32>
    %327 = tpu.reciprocal %326 {approx = true} : vector<8x1xf32> -> vector<8x1xf32>
    %328 = vector.broadcast %327 : vector<8x1xf32> to vector<8x8xf32>
    %329 = arith.mulf %324, %328 : vector<8x8xf32>
    %cst_128 = arith.constant dense<0.000000e+00> : vector<8x8xf32>
    %330 = tpu.matmul %329, %310, %cst_128 {dimension_numbers = #tpu.dot_dimension_numbers<[1], [0], [0], [1], [0, 0, 1, 1], [], []>} : vector<8x8xf32>, vector<8x8xf32>, vector<8x8xf32> -> vector<8x8xf32>
    %331 = vector.extract_strided_slice %306 {offsets = [0, 8], sizes = [8, 8], strides = [1, 1]} : vector<16x96xf32> to vector<8x8xf32>
    %332 = vector.extract_strided_slice %306 {offsets = [0, 40], sizes = [8, 8], strides = [1, 1]} : vector<16x96xf32> to vector<8x8xf32>
    %333 = vector.extract_strided_slice %306 {offsets = [0, 72], sizes = [8, 8], strides = [1, 1]} : vector<16x96xf32> to vector<8x8xf32>
    %cst_129 = arith.constant dense<0.000000e+00> : vector<8x8xf32>
    %334 = tpu.matmul %331, %332, %cst_129 {dimension_numbers = #tpu.dot_dimension_numbers<[1], [1], [0], [0], [0, 0, 1, 0], [], []>} : vector<8x8xf32>, vector<8x8xf32>, vector<8x8xf32> -> vector<8x8xf32>
    %cst_130 = arith.constant 0.353553385 : f32
    %335 = vector.broadcast %cst_130 : f32 to vector<8x8xf32>
    %336 = arith.mulf %334, %335 : vector<8x8xf32>
    %cst_131 = arith.constant 0.000000e+00 : f32
    %337 = vector.broadcast %cst_131 : f32 to vector<1x8xf32>
    %338 = arith.cmpf oeq, %307, %337 : vector<1x8xf32>
    %cst_132 = arith.constant -1.000000e+09 : f32
    %339 = vector.shape_cast %338 : vector<1x8xi1> to vector<1x8xi1>
    %340 = vector.broadcast %339 : vector<1x8xi1> to vector<8x8xi1>
    %341 = vector.broadcast %cst_132 : f32 to vector<8x8xf32>
    %342 = arith.select %340, %341, %336 : vector<8x8xi1>, vector<8x8xf32>
    %cst_133 = arith.constant dense<0xFF800000> : vector<8xf32>
    %343 = vector.multi_reduction <maximumf>, %342, %cst_133 [1] : vector<8x8xf32> to vector<8xf32>
    %344 = vector.shape_cast %343 : vector<8xf32> to vector<8x1xf32>
    %345 = vector.broadcast %344 : vector<8x1xf32> to vector<8x8xf32>
    %346 = arith.subf %342, %345 : vector<8x8xf32>
    %347 = math.exp %346 : vector<8x8xf32>
    %cst_134 = arith.constant dense<0.000000e+00> : vector<8xf32>
    %348 = vector.multi_reduction <add>, %347, %cst_134 [1] : vector<8x8xf32> to vector<8xf32>
    %349 = vector.shape_cast %348 : vector<8xf32> to vector<8x1xf32>
    %350 = tpu.reciprocal %349 {approx = true} : vector<8x1xf32> -> vector<8x1xf32>
    %351 = vector.broadcast %350 : vector<8x1xf32> to vector<8x8xf32>
    %352 = arith.mulf %347, %351 : vector<8x8xf32>
    %cst_135 = arith.constant dense<0.000000e+00> : vector<8x8xf32>
    %353 = tpu.matmul %352, %333, %cst_135 {dimension_numbers = #tpu.dot_dimension_numbers<[1], [0], [0], [1], [0, 0, 1, 1], [], []>} : vector<8x8xf32>, vector<8x8xf32>, vector<8x8xf32> -> vector<8x8xf32>
    %354 = vector.extract_strided_slice %306 {offsets = [0, 16], sizes = [8, 8], strides = [1, 1]} : vector<16x96xf32> to vector<8x8xf32>
    %355 = vector.extract_strided_slice %306 {offsets = [0, 48], sizes = [8, 8], strides = [1, 1]} : vector<16x96xf32> to vector<8x8xf32>
    %356 = vector.extract_strided_slice %306 {offsets = [0, 80], sizes = [8, 8], strides = [1, 1]} : vector<16x96xf32> to vector<8x8xf32>
    %cst_136 = arith.constant dense<0.000000e+00> : vector<8x8xf32>
    %357 = tpu.matmul %354, %355, %cst_136 {dimension_numbers = #tpu.dot_dimension_numbers<[1], [1], [0], [0], [0, 0, 1, 0], [], []>} : vector<8x8xf32>, vector<8x8xf32>, vector<8x8xf32> -> vector<8x8xf32>
    %cst_137 = arith.constant 0.353553385 : f32
    %358 = vector.broadcast %cst_137 : f32 to vector<8x8xf32>
    %359 = arith.mulf %357, %358 : vector<8x8xf32>
    %cst_138 = arith.constant 0.000000e+00 : f32
    %360 = vector.broadcast %cst_138 : f32 to vector<1x8xf32>
    %361 = arith.cmpf oeq, %307, %360 : vector<1x8xf32>
    %cst_139 = arith.constant -1.000000e+09 : f32
    %362 = vector.shape_cast %361 : vector<1x8xi1> to vector<1x8xi1>
    %363 = vector.broadcast %362 : vector<1x8xi1> to vector<8x8xi1>
    %364 = vector.broadcast %cst_139 : f32 to vector<8x8xf32>
    %365 = arith.select %363, %364, %359 : vector<8x8xi1>, vector<8x8xf32>
    %cst_140 = arith.constant dense<0xFF800000> : vector<8xf32>
    %366 = vector.multi_reduction <maximumf>, %365, %cst_140 [1] : vector<8x8xf32> to vector<8xf32>
    %367 = vector.shape_cast %366 : vector<8xf32> to vector<8x1xf32>
    %368 = vector.broadcast %367 : vector<8x1xf32> to vector<8x8xf32>
    %369 = arith.subf %365, %368 : vector<8x8xf32>
    %370 = math.exp %369 : vector<8x8xf32>
    %cst_141 = arith.constant dense<0.000000e+00> : vector<8xf32>
    %371 = vector.multi_reduction <add>, %370, %cst_141 [1] : vector<8x8xf32> to vector<8xf32>
    %372 = vector.shape_cast %371 : vector<8xf32> to vector<8x1xf32>
    %373 = tpu.reciprocal %372 {approx = true} : vector<8x1xf32> -> vector<8x1xf32>
    %374 = vector.broadcast %373 : vector<8x1xf32> to vector<8x8xf32>
    %375 = arith.mulf %370, %374 : vector<8x8xf32>
    %cst_142 = arith.constant dense<0.000000e+00> : vector<8x8xf32>
    %376 = tpu.matmul %375, %356, %cst_142 {dimension_numbers = #tpu.dot_dimension_numbers<[1], [0], [0], [1], [0, 0, 1, 1], [], []>} : vector<8x8xf32>, vector<8x8xf32>, vector<8x8xf32> -> vector<8x8xf32>
    %377 = vector.extract_strided_slice %306 {offsets = [0, 24], sizes = [8, 8], strides = [1, 1]} : vector<16x96xf32> to vector<8x8xf32>
    %378 = vector.extract_strided_slice %306 {offsets = [0, 56], sizes = [8, 8], strides = [1, 1]} : vector<16x96xf32> to vector<8x8xf32>
    %379 = vector.extract_strided_slice %306 {offsets = [0, 88], sizes = [8, 8], strides = [1, 1]} : vector<16x96xf32> to vector<8x8xf32>
    %cst_143 = arith.constant dense<0.000000e+00> : vector<8x8xf32>
    %380 = tpu.matmul %377, %378, %cst_143 {dimension_numbers = #tpu.dot_dimension_numbers<[1], [1], [0], [0], [0, 0, 1, 0], [], []>} : vector<8x8xf32>, vector<8x8xf32>, vector<8x8xf32> -> vector<8x8xf32>
    %cst_144 = arith.constant 0.353553385 : f32
    %381 = vector.broadcast %cst_144 : f32 to vector<8x8xf32>
    %382 = arith.mulf %380, %381 : vector<8x8xf32>
    %cst_145 = arith.constant 0.000000e+00 : f32
    %383 = vector.broadcast %cst_145 : f32 to vector<1x8xf32>
    %384 = arith.cmpf oeq, %307, %383 : vector<1x8xf32>
    %cst_146 = arith.constant -1.000000e+09 : f32
    %385 = vector.shape_cast %384 : vector<1x8xi1> to vector<1x8xi1>
    %386 = vector.broadcast %385 : vector<1x8xi1> to vector<8x8xi1>
    %387 = vector.broadcast %cst_146 : f32 to vector<8x8xf32>
    %388 = arith.select %386, %387, %382 : vector<8x8xi1>, vector<8x8xf32>
    %cst_147 = arith.constant dense<0xFF800000> : vector<8xf32>
    %389 = vector.multi_reduction <maximumf>, %388, %cst_147 [1] : vector<8x8xf32> to vector<8xf32>
    %390 = vector.shape_cast %389 : vector<8xf32> to vector<8x1xf32>
    %391 = vector.broadcast %390 : vector<8x1xf32> to vector<8x8xf32>
    %392 = arith.subf %388, %391 : vector<8x8xf32>
    %393 = math.exp %392 : vector<8x8xf32>
    %cst_148 = arith.constant dense<0.000000e+00> : vector<8xf32>
    %394 = vector.multi_reduction <add>, %393, %cst_148 [1] : vector<8x8xf32> to vector<8xf32>
    %395 = vector.shape_cast %394 : vector<8xf32> to vector<8x1xf32>
    %396 = tpu.reciprocal %395 {approx = true} : vector<8x1xf32> -> vector<8x1xf32>
    %397 = vector.broadcast %396 : vector<8x1xf32> to vector<8x8xf32>
    %398 = arith.mulf %393, %397 : vector<8x8xf32>
    %cst_149 = arith.constant dense<0.000000e+00> : vector<8x8xf32>
    %399 = tpu.matmul %398, %379, %cst_149 {dimension_numbers = #tpu.dot_dimension_numbers<[1], [0], [0], [1], [0, 0, 1, 1], [], []>} : vector<8x8xf32>, vector<8x8xf32>, vector<8x8xf32> -> vector<8x8xf32>
    %400 = tpu.concatenate %330, %353, %376, %399 in 1 : vector<8x8xf32>, vector<8x8xf32>, vector<8x8xf32>, vector<8x8xf32> -> vector<8x32xf32>
    %c1_150 = arith.constant 1 : index
    %c0_151 = arith.constant 0 : index
    %401 = vector.load %arg1[%c1_150, %c0_151] : memref<2x8xf32, #tpu.memory_space<vmem>>, vector<1x8xf32>
    %402 = vector.extract_strided_slice %306 {offsets = [8, 0], sizes = [8, 8], strides = [1, 1]} : vector<16x96xf32> to vector<8x8xf32>
    %403 = vector.extract_strided_slice %306 {offsets = [8, 32], sizes = [8, 8], strides = [1, 1]} : vector<16x96xf32> to vector<8x8xf32>
    %404 = vector.extract_strided_slice %306 {offsets = [8, 64], sizes = [8, 8], strides = [1, 1]} : vector<16x96xf32> to vector<8x8xf32>
    %cst_152 = arith.constant dense<0.000000e+00> : vector<8x8xf32>
    %405 = tpu.matmul %402, %403, %cst_152 {dimension_numbers = #tpu.dot_dimension_numbers<[1], [1], [0], [0], [0, 0, 1, 0], [], []>} : vector<8x8xf32>, vector<8x8xf32>, vector<8x8xf32> -> vector<8x8xf32>
    %cst_153 = arith.constant 0.353553385 : f32
    %406 = vector.broadcast %cst_153 : f32 to vector<8x8xf32>
    %407 = arith.mulf %405, %406 : vector<8x8xf32>
    %cst_154 = arith.constant 0.000000e+00 : f32
    %408 = vector.broadcast %cst_154 : f32 to vector<1x8xf32>
    %409 = arith.cmpf oeq, %401, %408 : vector<1x8xf32>
    %cst_155 = arith.constant -1.000000e+09 : f32
    %410 = vector.shape_cast %409 : vector<1x8xi1> to vector<1x8xi1>
    %411 = vector.broadcast %410 : vector<1x8xi1> to vector<8x8xi1>
    %412 = vector.broadcast %cst_155 : f32 to vector<8x8xf32>
    %413 = arith.select %411, %412, %407 : vector<8x8xi1>, vector<8x8xf32>
    %cst_156 = arith.constant dense<0xFF800000> : vector<8xf32>
    %414 = vector.multi_reduction <maximumf>, %413, %cst_156 [1] : vector<8x8xf32> to vector<8xf32>
    %415 = vector.shape_cast %414 : vector<8xf32> to vector<8x1xf32>
    %416 = vector.broadcast %415 : vector<8x1xf32> to vector<8x8xf32>
    %417 = arith.subf %413, %416 : vector<8x8xf32>
    %418 = math.exp %417 : vector<8x8xf32>
    %cst_157 = arith.constant dense<0.000000e+00> : vector<8xf32>
    %419 = vector.multi_reduction <add>, %418, %cst_157 [1] : vector<8x8xf32> to vector<8xf32>
    %420 = vector.shape_cast %419 : vector<8xf32> to vector<8x1xf32>
    %421 = tpu.reciprocal %420 {approx = true} : vector<8x1xf32> -> vector<8x1xf32>
    %422 = vector.broadcast %421 : vector<8x1xf32> to vector<8x8xf32>
    %423 = arith.mulf %418, %422 : vector<8x8xf32>
    %cst_158 = arith.constant dense<0.000000e+00> : vector<8x8xf32>
    %424 = tpu.matmul %423, %404, %cst_158 {dimension_numbers = #tpu.dot_dimension_numbers<[1], [0], [0], [1], [0, 0, 1, 1], [], []>} : vector<8x8xf32>, vector<8x8xf32>, vector<8x8xf32> -> vector<8x8xf32>
    %425 = vector.extract_strided_slice %306 {offsets = [8, 8], sizes = [8, 8], strides = [1, 1]} : vector<16x96xf32> to vector<8x8xf32>
    %426 = vector.extract_strided_slice %306 {offsets = [8, 40], sizes = [8, 8], strides = [1, 1]} : vector<16x96xf32> to vector<8x8xf32>
    %427 = vector.extract_strided_slice %306 {offsets = [8, 72], sizes = [8, 8], strides = [1, 1]} : vector<16x96xf32> to vector<8x8xf32>
    %cst_159 = arith.constant dense<0.000000e+00> : vector<8x8xf32>
    %428 = tpu.matmul %425, %426, %cst_159 {dimension_numbers = #tpu.dot_dimension_numbers<[1], [1], [0], [0], [0, 0, 1, 0], [], []>} : vector<8x8xf32>, vector<8x8xf32>, vector<8x8xf32> -> vector<8x8xf32>
    %cst_160 = arith.constant 0.353553385 : f32
    %429 = vector.broadcast %cst_160 : f32 to vector<8x8xf32>
    %430 = arith.mulf %428, %429 : vector<8x8xf32>
    %cst_161 = arith.constant 0.000000e+00 : f32
    %431 = vector.broadcast %cst_161 : f32 to vector<1x8xf32>
    %432 = arith.cmpf oeq, %401, %431 : vector<1x8xf32>
    %cst_162 = arith.constant -1.000000e+09 : f32
    %433 = vector.shape_cast %432 : vector<1x8xi1> to vector<1x8xi1>
    %434 = vector.broadcast %433 : vector<1x8xi1> to vector<8x8xi1>
    %435 = vector.broadcast %cst_162 : f32 to vector<8x8xf32>
    %436 = arith.select %434, %435, %430 : vector<8x8xi1>, vector<8x8xf32>
    %cst_163 = arith.constant dense<0xFF800000> : vector<8xf32>
    %437 = vector.multi_reduction <maximumf>, %436, %cst_163 [1] : vector<8x8xf32> to vector<8xf32>
    %438 = vector.shape_cast %437 : vector<8xf32> to vector<8x1xf32>
    %439 = vector.broadcast %438 : vector<8x1xf32> to vector<8x8xf32>
    %440 = arith.subf %436, %439 : vector<8x8xf32>
    %441 = math.exp %440 : vector<8x8xf32>
    %cst_164 = arith.constant dense<0.000000e+00> : vector<8xf32>
    %442 = vector.multi_reduction <add>, %441, %cst_164 [1] : vector<8x8xf32> to vector<8xf32>
    %443 = vector.shape_cast %442 : vector<8xf32> to vector<8x1xf32>
    %444 = tpu.reciprocal %443 {approx = true} : vector<8x1xf32> -> vector<8x1xf32>
    %445 = vector.broadcast %444 : vector<8x1xf32> to vector<8x8xf32>
    %446 = arith.mulf %441, %445 : vector<8x8xf32>
    %cst_165 = arith.constant dense<0.000000e+00> : vector<8x8xf32>
    %447 = tpu.matmul %446, %427, %cst_165 {dimension_numbers = #tpu.dot_dimension_numbers<[1], [0], [0], [1], [0, 0, 1, 1], [], []>} : vector<8x8xf32>, vector<8x8xf32>, vector<8x8xf32> -> vector<8x8xf32>
    %448 = vector.extract_strided_slice %306 {offsets = [8, 16], sizes = [8, 8], strides = [1, 1]} : vector<16x96xf32> to vector<8x8xf32>
    %449 = vector.extract_strided_slice %306 {offsets = [8, 48], sizes = [8, 8], strides = [1, 1]} : vector<16x96xf32> to vector<8x8xf32>
    %450 = vector.extract_strided_slice %306 {offsets = [8, 80], sizes = [8, 8], strides = [1, 1]} : vector<16x96xf32> to vector<8x8xf32>
    %cst_166 = arith.constant dense<0.000000e+00> : vector<8x8xf32>
    %451 = tpu.matmul %448, %449, %cst_166 {dimension_numbers = #tpu.dot_dimension_numbers<[1], [1], [0], [0], [0, 0, 1, 0], [], []>} : vector<8x8xf32>, vector<8x8xf32>, vector<8x8xf32> -> vector<8x8xf32>
    %cst_167 = arith.constant 0.353553385 : f32
    %452 = vector.broadcast %cst_167 : f32 to vector<8x8xf32>
    %453 = arith.mulf %451, %452 : vector<8x8xf32>
    %cst_168 = arith.constant 0.000000e+00 : f32
    %454 = vector.broadcast %cst_168 : f32 to vector<1x8xf32>
    %455 = arith.cmpf oeq, %401, %454 : vector<1x8xf32>
    %cst_169 = arith.constant -1.000000e+09 : f32
    %456 = vector.shape_cast %455 : vector<1x8xi1> to vector<1x8xi1>
    %457 = vector.broadcast %456 : vector<1x8xi1> to vector<8x8xi1>
    %458 = vector.broadcast %cst_169 : f32 to vector<8x8xf32>
    %459 = arith.select %457, %458, %453 : vector<8x8xi1>, vector<8x8xf32>
    %cst_170 = arith.constant dense<0xFF800000> : vector<8xf32>
    %460 = vector.multi_reduction <maximumf>, %459, %cst_170 [1] : vector<8x8xf32> to vector<8xf32>
    %461 = vector.shape_cast %460 : vector<8xf32> to vector<8x1xf32>
    %462 = vector.broadcast %461 : vector<8x1xf32> to vector<8x8xf32>
    %463 = arith.subf %459, %462 : vector<8x8xf32>
    %464 = math.exp %463 : vector<8x8xf32>
    %cst_171 = arith.constant dense<0.000000e+00> : vector<8xf32>
    %465 = vector.multi_reduction <add>, %464, %cst_171 [1] : vector<8x8xf32> to vector<8xf32>
    %466 = vector.shape_cast %465 : vector<8xf32> to vector<8x1xf32>
    %467 = tpu.reciprocal %466 {approx = true} : vector<8x1xf32> -> vector<8x1xf32>
    %468 = vector.broadcast %467 : vector<8x1xf32> to vector<8x8xf32>
    %469 = arith.mulf %464, %468 : vector<8x8xf32>
    %cst_172 = arith.constant dense<0.000000e+00> : vector<8x8xf32>
    %470 = tpu.matmul %469, %450, %cst_172 {dimension_numbers = #tpu.dot_dimension_numbers<[1], [0], [0], [1], [0, 0, 1, 1], [], []>} : vector<8x8xf32>, vector<8x8xf32>, vector<8x8xf32> -> vector<8x8xf32>
    %471 = vector.extract_strided_slice %306 {offsets = [8, 24], sizes = [8, 8], strides = [1, 1]} : vector<16x96xf32> to vector<8x8xf32>
    %472 = vector.extract_strided_slice %306 {offsets = [8, 56], sizes = [8, 8], strides = [1, 1]} : vector<16x96xf32> to vector<8x8xf32>
    %473 = vector.extract_strided_slice %306 {offsets = [8, 88], sizes = [8, 8], strides = [1, 1]} : vector<16x96xf32> to vector<8x8xf32>
    %cst_173 = arith.constant dense<0.000000e+00> : vector<8x8xf32>
    %474 = tpu.matmul %471, %472, %cst_173 {dimension_numbers = #tpu.dot_dimension_numbers<[1], [1], [0], [0], [0, 0, 1, 0], [], []>} : vector<8x8xf32>, vector<8x8xf32>, vector<8x8xf32> -> vector<8x8xf32>
    %cst_174 = arith.constant 0.353553385 : f32
    %475 = vector.broadcast %cst_174 : f32 to vector<8x8xf32>
    %476 = arith.mulf %474, %475 : vector<8x8xf32>
    %cst_175 = arith.constant 0.000000e+00 : f32
    %477 = vector.broadcast %cst_175 : f32 to vector<1x8xf32>
    %478 = arith.cmpf oeq, %401, %477 : vector<1x8xf32>
    %cst_176 = arith.constant -1.000000e+09 : f32
    %479 = vector.shape_cast %478 : vector<1x8xi1> to vector<1x8xi1>
    %480 = vector.broadcast %479 : vector<1x8xi1> to vector<8x8xi1>
    %481 = vector.broadcast %cst_176 : f32 to vector<8x8xf32>
    %482 = arith.select %480, %481, %476 : vector<8x8xi1>, vector<8x8xf32>
    %cst_177 = arith.constant dense<0xFF800000> : vector<8xf32>
    %483 = vector.multi_reduction <maximumf>, %482, %cst_177 [1] : vector<8x8xf32> to vector<8xf32>
    %484 = vector.shape_cast %483 : vector<8xf32> to vector<8x1xf32>
    %485 = vector.broadcast %484 : vector<8x1xf32> to vector<8x8xf32>
    %486 = arith.subf %482, %485 : vector<8x8xf32>
    %487 = math.exp %486 : vector<8x8xf32>
    %cst_178 = arith.constant dense<0.000000e+00> : vector<8xf32>
    %488 = vector.multi_reduction <add>, %487, %cst_178 [1] : vector<8x8xf32> to vector<8xf32>
    %489 = vector.shape_cast %488 : vector<8xf32> to vector<8x1xf32>
    %490 = tpu.reciprocal %489 {approx = true} : vector<8x1xf32> -> vector<8x1xf32>
    %491 = vector.broadcast %490 : vector<8x1xf32> to vector<8x8xf32>
    %492 = arith.mulf %487, %491 : vector<8x8xf32>
    %cst_179 = arith.constant dense<0.000000e+00> : vector<8x8xf32>
    %493 = tpu.matmul %492, %473, %cst_179 {dimension_numbers = #tpu.dot_dimension_numbers<[1], [0], [0], [1], [0, 0, 1, 1], [], []>} : vector<8x8xf32>, vector<8x8xf32>, vector<8x8xf32> -> vector<8x8xf32>
    %494 = tpu.concatenate %424, %447, %470, %493 in 1 : vector<8x8xf32>, vector<8x8xf32>, vector<8x8xf32>, vector<8x8xf32> -> vector<8x32xf32>
    %495 = tpu.concatenate %400, %494 in 0 : vector<8x32xf32>, vector<8x32xf32> -> vector<16x32xf32>
    %c1_180 = arith.constant 1 : index
    %c0_181 = arith.constant 0 : index
    %c0_182 = arith.constant 0 : index
    %496 = vector.load %arg6[%c1_180, %c0_181, %c0_182] : memref<2x32x32xf32, #tpu.memory_space<vmem>>, vector<1x32x32xf32>
    %497 = vector.shape_cast %496 : vector<1x32x32xf32> to vector<32x32xf32>
    %cst_183 = arith.constant dense<0.000000e+00> : vector<16x32xf32>
    %498 = tpu.matmul %495, %497, %cst_183 {dimension_numbers = #tpu.dot_dimension_numbers<[1], [0], [0], [1], [0, 0, 1, 1], [], []>} : vector<16x32xf32>, vector<32x32xf32>, vector<16x32xf32> -> vector<16x32xf32>
    %c1_184 = arith.constant 1 : index
    %c0_185 = arith.constant 0 : index
    %499 = vector.load %arg7[%c1_184, %c0_185] : memref<2x32xf32, #tpu.memory_space<vmem>>, vector<1x32xf32>
    %500 = vector.broadcast %499 : vector<1x32xf32> to vector<16x32xf32>
    %501 = arith.addf %498, %500 : vector<16x32xf32>
    %502 = arith.addf %276, %501 : vector<16x32xf32>
    %c1_186 = arith.constant 1 : index
    %c0_187 = arith.constant 0 : index
    %503 = vector.load %arg8[%c1_186, %c0_187] : memref<2x32xf32, #tpu.memory_space<vmem>>, vector<1x32xf32>
    %c1_188 = arith.constant 1 : index
    %c0_189 = arith.constant 0 : index
    %504 = vector.load %arg9[%c1_188, %c0_189] : memref<2x32xf32, #tpu.memory_space<vmem>>, vector<1x32xf32>
    %cst_190 = arith.constant dense<0.000000e+00> : vector<16xf32>
    %505 = vector.multi_reduction <add>, %502, %cst_190 [1] : vector<16x32xf32> to vector<16xf32>
    %506 = vector.shape_cast %505 : vector<16xf32> to vector<16x1xf32>
    %cst_191 = arith.constant 3.200000e+01 : f32
    %507 = vector.broadcast %cst_191 : f32 to vector<16x1xf32>
    %508 = arith.divf %506, %507 : vector<16x1xf32>
    %509 = vector.broadcast %508 : vector<16x1xf32> to vector<16x32xf32>
    %510 = arith.subf %502, %509 : vector<16x32xf32>
    %511 = arith.mulf %510, %510 : vector<16x32xf32>
    %cst_192 = arith.constant dense<0.000000e+00> : vector<16xf32>
    %512 = vector.multi_reduction <add>, %511, %cst_192 [1] : vector<16x32xf32> to vector<16xf32>
    %513 = vector.shape_cast %512 : vector<16xf32> to vector<16x1xf32>
    %cst_193 = arith.constant 3.200000e+01 : f32
    %514 = vector.broadcast %cst_193 : f32 to vector<16x1xf32>
    %515 = arith.divf %513, %514 : vector<16x1xf32>
    %516 = vector.broadcast %508 : vector<16x1xf32> to vector<16x32xf32>
    %517 = arith.subf %502, %516 : vector<16x32xf32>
    %cst_194 = arith.constant 9.99999974E-6 : f32
    %518 = vector.broadcast %cst_194 : f32 to vector<16x1xf32>
    %519 = arith.addf %515, %518 : vector<16x1xf32>
    %520 = math.rsqrt %519 : vector<16x1xf32>
    %521 = vector.broadcast %520 : vector<16x1xf32> to vector<16x32xf32>
    %522 = arith.mulf %517, %521 : vector<16x32xf32>
    %523 = vector.broadcast %503 : vector<1x32xf32> to vector<16x32xf32>
    %524 = arith.mulf %522, %523 : vector<16x32xf32>
    %525 = vector.broadcast %504 : vector<1x32xf32> to vector<16x32xf32>
    %526 = arith.addf %524, %525 : vector<16x32xf32>
    %c1_195 = arith.constant 1 : index
    %c0_196 = arith.constant 0 : index
    %c0_197 = arith.constant 0 : index
    %527 = vector.load %arg10[%c1_195, %c0_196, %c0_197] : memref<2x32x128xf32, #tpu.memory_space<vmem>>, vector<1x32x128xf32>
    %528 = vector.shape_cast %527 : vector<1x32x128xf32> to vector<32x128xf32>
    %cst_198 = arith.constant dense<0.000000e+00> : vector<16x128xf32>
    %529 = tpu.matmul %526, %528, %cst_198 {dimension_numbers = #tpu.dot_dimension_numbers<[1], [0], [0], [1], [0, 0, 1, 1], [], []>} : vector<16x32xf32>, vector<32x128xf32>, vector<16x128xf32> -> vector<16x128xf32>
    %c1_199 = arith.constant 1 : index
    %c0_200 = arith.constant 0 : index
    %530 = vector.load %arg11[%c1_199, %c0_200] : memref<2x128xf32, #tpu.memory_space<vmem>>, vector<1x128xf32>
    %531 = vector.broadcast %530 : vector<1x128xf32> to vector<16x128xf32>
    %532 = arith.addf %529, %531 : vector<16x128xf32>
    %533 = arith.mulf %532, %532 : vector<16x128xf32>
    %534 = arith.mulf %532, %533 : vector<16x128xf32>
    %cst_201 = arith.constant 4.471500e-02 : f32
    %535 = vector.broadcast %cst_201 : f32 to vector<16x128xf32>
    %536 = arith.mulf %535, %534 : vector<16x128xf32>
    %537 = arith.addf %532, %536 : vector<16x128xf32>
    %cst_202 = arith.constant 0.797884583 : f32
    %538 = vector.broadcast %cst_202 : f32 to vector<16x128xf32>
    %539 = arith.mulf %538, %537 : vector<16x128xf32>
    %540 = math.tanh %539 : vector<16x128xf32>
    %cst_203 = arith.constant 1.000000e+00 : f32
    %541 = vector.broadcast %cst_203 : f32 to vector<16x128xf32>
    %542 = arith.addf %541, %540 : vector<16x128xf32>
    %cst_204 = arith.constant 5.000000e-01 : f32
    %543 = vector.broadcast %cst_204 : f32 to vector<16x128xf32>
    %544 = arith.mulf %543, %542 : vector<16x128xf32>
    %545 = arith.mulf %532, %544 : vector<16x128xf32>
    %c1_205 = arith.constant 1 : index
    %c0_206 = arith.constant 0 : index
    %c0_207 = arith.constant 0 : index
    %546 = vector.load %arg12[%c1_205, %c0_206, %c0_207] : memref<2x128x32xf32, #tpu.memory_space<vmem>>, vector<1x128x32xf32>
    %547 = vector.shape_cast %546 : vector<1x128x32xf32> to vector<128x32xf32>
    %cst_208 = arith.constant dense<0.000000e+00> : vector<16x32xf32>
    %548 = tpu.matmul %545, %547, %cst_208 {dimension_numbers = #tpu.dot_dimension_numbers<[1], [0], [0], [1], [0, 0, 1, 1], [], []>} : vector<16x128xf32>, vector<128x32xf32>, vector<16x32xf32> -> vector<16x32xf32>
    %c1_209 = arith.constant 1 : index
    %c0_210 = arith.constant 0 : index
    %549 = vector.load %arg13[%c1_209, %c0_210] : memref<2x32xf32, #tpu.memory_space<vmem>>, vector<1x32xf32>
    %550 = vector.broadcast %549 : vector<1x32xf32> to vector<16x32xf32>
    %551 = arith.addf %548, %550 : vector<16x32xf32>
    %552 = arith.addf %502, %551 : vector<16x32xf32>
    %553 = vector.extract_strided_slice %552 {offsets = [7, 0], sizes = [1, 32], strides = [1, 1]} : vector<16x32xf32> to vector<1x32xf32>
    %554 = vector.extract_strided_slice %552 {offsets = [15, 0], sizes = [1, 32], strides = [1, 1]} : vector<16x32xf32> to vector<1x32xf32>
    %555 = tpu.concatenate %553, %554 in 0 : vector<1x32xf32>, vector<1x32xf32> -> vector<2x32xf32>
    %c0_211 = arith.constant 0 : index
    %c0_212 = arith.constant 0 : index
    %556 = vector.load %arg14[%c0_211, %c0_212] : memref<32x32xf32, #tpu.memory_space<vmem>>, vector<32x32xf32>
    %cst_213 = arith.constant dense<0.000000e+00> : vector<2x32xf32>
    %557 = tpu.matmul %555, %556, %cst_213 {dimension_numbers = #tpu.dot_dimension_numbers<[1], [0], [0], [1], [0, 0, 1, 1], [], []>} : vector<2x32xf32>, vector<32x32xf32>, vector<2x32xf32> -> vector<2x32xf32>
    %c0_214 = arith.constant 0 : index
    %c0_215 = arith.constant 0 : index
    %558 = vector.load %arg15[%c0_214, %c0_215] : memref<1x32xf32, #tpu.memory_space<vmem>>, vector<1x32xf32>
    %559 = vector.broadcast %558 : vector<1x32xf32> to vector<2x32xf32>
    %560 = arith.addf %557, %559 : vector<2x32xf32>
    %561 = arith.mulf %560, %560 : vector<2x32xf32>
    %562 = arith.mulf %560, %561 : vector<2x32xf32>
    %cst_216 = arith.constant 4.471500e-02 : f32
    %563 = vector.broadcast %cst_216 : f32 to vector<2x32xf32>
    %564 = arith.mulf %563, %562 : vector<2x32xf32>
    %565 = arith.addf %560, %564 : vector<2x32xf32>
    %cst_217 = arith.constant 0.797884583 : f32
    %566 = vector.broadcast %cst_217 : f32 to vector<2x32xf32>
    %567 = arith.mulf %566, %565 : vector<2x32xf32>
    %568 = math.tanh %567 : vector<2x32xf32>
    %cst_218 = arith.constant 1.000000e+00 : f32
    %569 = vector.broadcast %cst_218 : f32 to vector<2x32xf32>
    %570 = arith.addf %569, %568 : vector<2x32xf32>
    %cst_219 = arith.constant 5.000000e-01 : f32
    %571 = vector.broadcast %cst_219 : f32 to vector<2x32xf32>
    %572 = arith.mulf %571, %570 : vector<2x32xf32>
    %573 = arith.mulf %560, %572 : vector<2x32xf32>
    %c0_220 = arith.constant 0 : index
    %c0_221 = arith.constant 0 : index
    %574 = vector.load %arg16[%c0_220, %c0_221] : memref<32x32xf32, #tpu.memory_space<vmem>>, vector<32x32xf32>
    %cst_222 = arith.constant dense<0.000000e+00> : vector<2x32xf32>
    %575 = tpu.matmul %573, %574, %cst_222 {dimension_numbers = #tpu.dot_dimension_numbers<[1], [0], [0], [1], [0, 0, 1, 1], [], []>} : vector<2x32xf32>, vector<32x32xf32>, vector<2x32xf32> -> vector<2x32xf32>
    %c0_223 = arith.constant 0 : index
    %c0_224 = arith.constant 0 : index
    %576 = vector.load %arg17[%c0_223, %c0_224] : memref<1x32xf32, #tpu.memory_space<vmem>>, vector<1x32xf32>
    %577 = vector.broadcast %576 : vector<1x32xf32> to vector<2x32xf32>
    %578 = arith.addf %575, %577 : vector<2x32xf32>
    %c0_225 = arith.constant 0 : index
    %c0_226 = arith.constant 0 : index
    %579 = vector.load %arg18[%c0_225, %c0_226] : memref<2x32xf32, #tpu.memory_space<vmem>>, vector<2x32xf32>
    tpu.vector_store %arg18[%c0_225, %c0_226], %578 {strides = array<i32>} : memref<2x32xf32, #tpu.memory_space<vmem>>, vector<2x32xf32>,
    return
  }
}

</mosaic_0001>

<bundles_post_ra>
// kernel: bert4rec_forward.1
= control target key start
LH: loop header
LB: loop body
LE: loop exit
PB: predicated region body
PF: predicated region fallthrough
CT: control target
= control target key end

     0   :  { %s2846_s0 = inlined_call_operand.vmem [shape: f32[16,32], index: 0, kind: input, shape index: {}]   ;;  %s2847_s1 = inlined_call_operand.vmem [shape: f32[2,8], index: 1, kind: input, shape index: {}]   ;;  %s2848_s2 = inlined_call_operand.vmem [shape: f32[2,32], index: 2, kind: input, shape index: {}]   ;;  %s2849_s3 = inlined_call_operand.vmem [shape: f32[2,32], index: 3, kind: input, shape index: {}]   ;;  %s2850_s4 = inlined_call_operand.vmem [shape: f32[2,32,96], index: 4, kind: input, shape index: {}]   ;;  %s2851_s5 = inlined_call_operand.vmem [shape: f32[2,96], index: 5, kind: input, shape index: {}]   ;;  %s2852_s6 = inlined_call_operand.vmem [shape: f32[2,32,32], index: 6, kind: input, shape index: {}]   ;;  %s2853_s7 = inlined_call_operand.vmem [shape: f32[2,32], index: 7, kind: input, shape index: {}]   ;;  %s2854_s8 = inlined_call_operand.vmem [shape: f32[2,32], index: 8, kind: input, shape index: {}]   ;;  %s2855_s9 = inlined_call_operand.vmem [shape: f32[2,32], index: 9, kind: input, shape index: {}]   ;;  %s2856_s10 = inlined_call_operand.vmem [shape: f32[2,32,128], index: 10, kind: input, shape index: {}]   ;;  %s2857_s11 = inlined_call_operand.vmem [shape: f32[2,128], index: 11, kind: input, shape index: {}]   ;;  %s2858_s12 = inlined_call_operand.vmem [shape: f32[2,128,32], index: 12, kind: input, shape index: {}]   ;;  %s2859_s13 = inlined_call_operand.vmem [shape: f32[2,32], index: 13, kind: input, shape index: {}]   ;;  %s2860_s14 = inlined_call_operand.vmem [shape: f32[32,32], index: 14, kind: input, shape index: {}]   ;;  %s2861_s15 = inlined_call_operand.vmem [shape: f32[1,32], index: 15, kind: input, shape index: {}]   ;;  %s2862_s16 = inlined_call_operand.vmem [shape: f32[32,32], index: 16, kind: input, shape index: {}]   ;;  %s2863_s17 = inlined_call_operand.vmem [shape: f32[1,32], index: 17, kind: input, shape index: {}]   ;;  %s2864_s18 = inlined_call_operand.hbm [shape: f32[2,32], index: 18, kind: output, shape index: {}]  }
   0x1   :  { %2888 = sst [smem:[#allocation5_spill]] %s2846_s0 }
   0x2   :  { %2889 = sst [smem:[#allocation6_spill]] %s2847_s1 }
   0x3   :  { %2890 = sst [smem:[#allocation7_spill]] %s2848_s2 }
   0x4   :  { %s2891_s29 = sld [smem:[#allocation5_spill]]  ;;  %vm64_vm0 = vcmask 261120  }
   0xa   :  { %v2214_v0 = vld [vmem:[%s2891_s29] sm:$0xff] }
   0xb   :  { %v65_v1 = vsel %vm64_vm0, %v2214_v0, 0.0 }
   0xc   :  { %66 = vadd.xlane.f32.xlu0 %v65_v1 }
   0xd   :  { %23 = vsyncpa [#allocation3], 0  ;;  %v2099_v2 = vmov 32.0   ;;  %v125_v14 = vld [vmem:[%s2850_s4 + $0x18] sm:$0xff]  ;;  %v124_v15 = vld [vmem:[%s2850_s4 + $0x10] sm:$0xff]  ;;  %s2892_s25 = sld [smem:[#allocation7_spill]] }
   0xe   :  { %1981 = vrcp.f32 %v2099_v2  ;;  %146 = vmatpush.msra.mxu0 %v125_v14  ;;  %v123_v16 = vld [vmem:[%s2850_s4 + $0x8] sm:$0xff]  ;;  %v122_v17 = vld [vmem:[%s2850_s4] sm:$0xff]  ;;  %s2872_s0 = smov 80   ;;  %s2101_s19 = smov 120   ;;  %vm161_vm5 = vcmask 64512   ;;  %v2105_v49 = vmov 0  }
   0xf   :  { %v2244_v30 = vld [vmem:[%s2849_s3] ss:$0 sm:$0xff]  ;;  %s2102_s1 = smov 96   ;;  %s2103_s20 = smov 88   ;;  %v2270_v36 = vld [vmem:[%s2891_s29 + $0x8] sm:$0xff]  ;;  %vm443_vm13 = vcmask 130048  }
  0x10   :  { %147 = vmatpush.msra.mxu0 %v124_v15  ;;  %v2252_v33 = vld [vmem:[%s2851_s5] ss:$0 sm:$0xff]  ;;  %s2874_s21 = smov 112   ;;  %v68_v37 = vsel %vm64_vm0, %v2270_v36, 0.0  ;;  %s2893_s24 = sld [smem:[#allocation6_spill]]  ;;  %vm445_vm14 = vcmask 195584  }
  0x11   :  { %s2886_s26 = smov 64   ;;  %s2870_s27 = smov 72  }
  0x12   :  { %148 = vmatpush.msra.mxu0 %v123_v16  ;;  %s2878_s28 = smov 104   ;;  %s2868_s30 = smov 48  }
  0x13   :  { %v2239_v27 = vld [vmem:[%s2892_s25] ss:$0 sm:$0xff]  ;;  %s2110_s22 = smov 56   ;;  %s2876_s2 = smov 40  }
  0x14   :  { %v1982_v3 = vpop.eup %1981  ;;  %149 = vmatpush.msra.mxu0 %v122_v17  ;;  %s2884_s29 = smov 8   ;;  %s2882_s23 = smov 24  }
  0x15   :  { %v72_v4 = vmul.f32 32.0, %v1982_v3  ;;  %vm76_vm1 = vweird.f32 %v1982_v3 }
  0x16   :  { %v157_v48 = vld [vmem:[%s2893_s24] sm:$0x1] }
  0x17   :  { %v73_v5 = vsub.f32 1.0, %v72_v4  ;;  %vm187_vm6 = vcmp.eq.f32.partialorder %v157_v48, 0.0 }
  0x18   :  { %v188_v50 = vsel %vm187_vm6, 1, %v2105_v49 }
  0x19   :  { %v74_v6 = vmul.f32 %v1982_v3, %v73_v5  ;;  %v189_v51 = vperm.slane %v188_v50, 0 }
  0x1b   :  { %v75_v7 = vadd.f32 %v1982_v3, %v74_v6  ;;  %vm2288_vm7 = vcmp.eq.s32.totalorder %v189_v51, 1 }
  0x1d   :  { %v2218_v8 = vsel %vm76_vm1, %v1982_v3, %v75_v7 }
  0x7f   :  { %v67_v9 = vpop.xlane.xlu0 %66 }
  0x80   :  { %v78_v10 = vmul.f32 %v2218_v8, %v67_v9 }
  0x82   :  { %v80_v11 = vsub.f32 %v2214_v0, %v78_v10 }
  0x84   :  { %v82_v12 = vmul.f32 %v80_v11, %v80_v11 }
  0x86   :  { %v84_v13 = vsel %vm64_vm0, %v82_v12, 0.0 }
  0x87   :  { %85 = vadd.xlane.f32.xlu0 %v84_v13 }
  0xfa   :  { %v86_v18 = vpop.xlane.xlu0 %85 }
  0xfb   :  { %v90_v19 = vmul.f32 %v86_v18, %v2218_v8 }
  0xfd   :  { %v92_v20 = vadd.f32 1e-05, %v90_v19 }
  0xff   :  { %1983 = vrsqrt.f32 %v92_v20  ;;  %vm100_vm3 = vweird.f32 %v92_v20 }
 0x105   :  { %v1984_v21 = vpop.eup %1983 }
 0x106   :  { %v95_v22 = vmul.f32 %v1984_v21, %v92_v20  ;;  %vm101_vm2 = vweird.f32 %v1984_v21 }
 0x107   :  { %vm102_vm4 = vmor %vm100_vm3, %vm101_vm2 }
 0x108   :  { %v96_v23 = vmul.f32 %v1984_v21, %v95_v22 }
 0x10a   :  { %v97_v24 = vmul.f32 0.5, %v96_v23 }
 0x10c   :  { %v98_v25 = vsub.f32 1.5, %v97_v24 }
 0x10e   :  { %v99_v26 = vmul.f32 %v1984_v21, %v98_v25 }
 0x110   :  { %v103_v28 = vsel %vm102_vm4, %v1984_v21, %v99_v26 }
 0x111   :  { %v114_v29 = vmul.f32 %v103_v28, %v80_v11 }
 0x113   :  { %v117_v31 = vmul.f32 %v2239_v27, %v114_v29 }
 0x115   :  { %v120_v32 = vadd.f32 %v2244_v30, %v117_v31 }
 0x117   :  { %1856 = vmatmul.msk.f32.vlgmr.msra.gmra.mxu0 %vm64_vm0, %v120_v32 }
 0x194   :  { %v151_v34 = vpop.f32.mrf.mxu0 }
 0x195   :  { %v2255_v35 = vadd.f32 %v2252_v33, %v151_v34 }
 0x197   :  { %298 = vrot.lane.b32.xlu0 %v2255_v35, %s2872_s0  ;;  %229 = vrot.lane.b32.xlu2 %v2255_v35, %s2101_s19 }
 0x198   :  { %159 = vrot.lane.b32.xlu1 %v2255_v35, %s2102_s1 }
 0x1a0   :  { %231 = vrot.lane.b32.xlu1 %v2255_v35, %s2103_s20 }
 0x1a8   :  { %296 = vrot.lane.b32.xlu1 %v2255_v35, %s2874_s21 }
 0x1c0   :  { %69 = vadd.xlane.f32.xlu2 %v68_v37 }
 0x1f1   :  { %v230_v41 = vpop.permute.xlu2 %229 }
 0x209   :  { %v299_v38 = vpop.permute.xlu0 %298 }
 0x20a   :  { %v160_v39 = vpop.permute.xlu1 %159  ;;  %1864 = vmatpush.xpose.msk.msra.mxu1 %vm161_vm5, %v299_v38 }
 0x20b   :  { %1858 = vmatpush.xpose.msk.msra.mxu3 %vm161_vm5, %v160_v39 }
 0x20e   :  { %1859 = vmatmul.msk.f32.vlgmr.msra.gmra.mxu3 %vm161_vm5, %v2255_v35 }
 0x212   :  { %v232_v40 = vpop.permute.xlu1 %231 }
 0x213   :  { %1861 = vmatpush.xpose.msk.msrb.mxu3 %vm161_vm5, %v232_v40 }
 0x216   :  { %1862 = vmatmul.msk.f32.vlgmr.msrb.gmra.mxu3 %vm161_vm5, %v230_v41 }
 0x21a   :  { %v297_v42 = vpop.permute.xlu1 %296 }
 0x21b   :  { %1865 = vmatmul.msk.f32.vlgmr.msra.gmra.mxu1 %vm161_vm5, %v297_v42 }
 0x233   :  { %v70_v43 = vpop.xlane.xlu2 %69 }
 0x234   :  { %v79_v44 = vmul.f32 %v2218_v8, %v70_v43 }
 0x236   :  { %v81_v45 = vsub.f32 %v2270_v36, %v79_v44 }
 0x238   :  { %v83_v46 = vmul.f32 %v81_v45, %v81_v45 }
 0x23a   :  { %v87_v47 = vsel %vm64_vm0, %v83_v46, 0.0 }
 0x23b   :  { %88 = vadd.xlane.f32.xlu2 %v87_v47 }
 0x291   :  { %v183_v52 = vpop.f32.mrf.mxu3 }
 0x292   :  { %v186_v54 = vmul.f32 0.35355338, %v183_v52 }
 0x294   :  { %v191_v55 = vsel %vm2288_vm7, -1e+09, %v186_v54 }
 0x295   :  { %v192_v56 = vsel %vm161_vm5, %v191_v55, -inf }
 0x296   :  { %193 = vmax.xlane.f32.xlu1 %v192_v56 }
 0x299   :  { %v254_v57 = vpop.f32.mrf.mxu3 }
 0x29a   :  { %v257_v58 = vmul.f32 0.35355338, %v254_v57 }
 0x29c   :  { %v258_v59 = vsel %vm2288_vm7, -1e+09, %v257_v58  ;;  %v447_v58 = vld [vmem:[%s2893_s24 + $0x1] sm:$0x1]  ;;  %s2880_s24 = smov 16  }
 0x29d   :  { %v259_v60 = vsel %vm161_vm5, %v258_v59, -inf  ;;  %vm476_vm11 = vcmp.eq.f32.partialorder %v447_v58, 0.0  ;;  %v737_v58 = vld [vmem:[%s2852_s6 + $0x18] sm:$0xff] }
 0x29e   :  { %260 = vmax.xlane.f32.xlu0 %v259_v60 }
 0x2ae   :  { %v89_v61 = vpop.xlane.xlu2 %88 }
 0x2af   :  { %v91_v62 = vmul.f32 %v89_v61, %v2218_v8  ;;  %203 = vrot.lane.b32.xlu1 %v2255_v35, %s2886_s26 }
 0x2b1   :  { %v93_v63 = vadd.f32 1e-05, %v91_v62 }
 0x2b2   :  { %365 = vrot.lane.b32.xlu0 %v2255_v35, %s2870_s27 }
 0x2b3   :  { %1985 = vrsqrt.f32 %v93_v63  ;;  %vm110_vm8 = vweird.f32 %v93_v63 }
 0x2b7   :  { %363 = vrot.lane.b32.xlu1 %v2255_v35, %s2878_s28 }
 0x2b9   :  { %v1986_v1 = vpop.eup %1985 }
 0x2ba   :  { %v105_v2 = vmul.f32 %v1986_v1, %v93_v63  ;;  %vm111_vm9 = vweird.f32 %v1986_v1 }
 0x2bb   :  { %vm112_vm10 = vmor %vm110_vm8, %vm111_vm9 }
 0x2bc   :  { %v106_v3 = vmul.f32 %v1986_v1, %v105_v2 }
 0x2be   :  { %v107_v4 = vmul.f32 0.5, %v106_v3 }
 0x2bf   :  { %337 = vrot.lane.b32.xlu1 %v2255_v35, %s2868_s30 }
 0x2c0   :  { %v108_v5 = vsub.f32 1.5, %v107_v4 }
 0x2c2   :  { %v109_v6 = vmul.f32 %v1986_v1, %v108_v5 }
 0x2c4   :  { %v113_v7 = vsel %vm112_vm10, %v1986_v1, %v109_v6 }
 0x2c5   :  { %v115_v9 = vmul.f32 %v113_v7, %v81_v45 }
 0x2c7   :  { %v118_v10 = vmul.f32 %v2239_v27, %v115_v9  ;;  %v321_v27 = vpop.f32.mrf.mxu1 }
 0x2c8   :  { %v324_v28 = vmul.f32 0.35355338, %v321_v27 }
 0x2c9   :  { %v121_v11 = vadd.f32 %v2244_v30, %v118_v10 }
 0x2ca   :  { %v325_v29 = vsel %vm2288_vm7, -1e+09, %v324_v28 }
 0x2cb   :  { %1857 = vmatmul.msk.f32.gmra.mxu0 %vm64_vm0, %v121_v11  ;;  %v326_v30 = vsel %vm161_vm5, %v325_v29, -inf }
 0x309   :  { %v194_v12 = vpop.xlane.xlu1 %193 }
 0x30a   :  { %v195_v13 = vsub.f32 %v191_v55, %v194_v12 }
 0x30c   :  { %v196_v14 = vmul.f32 1.442695, %v195_v13 }
 0x30e   :  { %1987 = vpow2.f32 %v196_v14 }
 0x311   :  { %v261_v15 = vpop.xlane.xlu0 %260 }
 0x312   :  { %v262_v16 = vsub.f32 %v258_v59, %v261_v15  ;;  %v477_v59 = vsel %vm476_vm11, 1, %v2105_v49 }
 0x313   :  { %v478_v60 = vperm.slane %v477_v59, 0  ;;  %v736_v59 = vld [vmem:[%s2852_s6 + $0x10] sm:$0xff] }
 0x314   :  { %v1988_v17 = vpop.eup %1987  ;;  %v263_v18 = vmul.f32 1.442695, %v262_v16 }
 0x315   :  { %v198_v19 = vsel %vm161_vm5, %v1988_v17, 0.0  ;;  %vm2356_vm12 = vcmp.eq.s32.totalorder %v478_v60, 1 }
 0x316   :  { %1989 = vpow2.f32 %v263_v18  ;;  %199 = vadd.xlane.f32.xlu2 %v198_v19 }
 0x31c   :  { %v1990_v20 = vpop.eup %1989 }
 0x31d   :  { %v265_v21 = vsel %vm161_vm5, %v1990_v20, 0.0 }
 0x31e   :  { %266 = vadd.xlane.f32.xlu2 %v265_v21 }
 0x321   :  { %v204_v22 = vpop.permute.xlu1 %203 }
 0x322   :  { %224 = vmatpush.msra.mxu2 %v204_v22 }
 0x324   :  { %v366_v40 = vpop.permute.xlu0 %365 }
 0x329   :  { %v364_v23 = vpop.permute.xlu1 %363 }
 0x331   :  { %v338_v24 = vpop.permute.xlu1 %337 }
 0x332   :  { %358 = vmatpush.msra.mxu3 %v338_v24 }
 0x336   :  { %270 = vrot.lane.b32.xlu2 %v2255_v35, %s2110_s22 }
 0x348   :  { %v154_v25 = vpop.f32.mrf.mxu0 }
 0x349   :  { %v2315_v26 = vadd.f32 %v2252_v33, %v154_v25 }
 0x34b   :  { %449 = vrot.lane.b32.xlu1 %v2315_v26, %s2102_s1 }
 0x353   :  { %520 = vrot.lane.b32.xlu1 %v2315_v26, %s2103_s20 }
 0x35b   :  { %518 = vrot.lane.b32.xlu1 %v2315_v26, %s2101_s19 }
 0x35f   :  { %327 = vmax.xlane.f32.xlu2 %v326_v30 }
 0x363   :  { %587 = vrot.lane.b32.xlu1 %v2315_v26, %s2872_s0  ;;  %s2900_s0 = smov 112  }
 0x36b   :  { %585 = vrot.lane.b32.xlu1 %v2315_v26, %s2874_s21  ;;  %s2901_s21 = smov 40  }
 0x377   :  { %654 = vrot.lane.b32.xlu2 %v2315_v26, %s2870_s27  ;;  %s2902_s27 = smov 80  }
 0x37f   :  { %404 = vrot.lane.b32.xlu2 %v2255_v35, %s2876_s2 }
 0x389   :  { %v200_v31 = vpop.xlane.xlu2 %199 }
 0x38a   :  { %1991 = vrcp.f32 %v200_v31 }
 0x390   :  { %v1992_v32 = vpop.eup %1991 }
 0x391   :  { %v267_v33 = vpop.xlane.xlu2 %266  ;;  %v202_v34 = vmul.f32 %v1992_v32, %v1988_v17 }
 0x392   :  { %1993 = vrcp.f32 %v267_v33 }
 0x393   :  { %1860 = vmatmul.msk.f32.vlgmr.msra.gmra.mxu2 %vm161_vm5, %v202_v34 }
 0x398   :  { %v1994_v37 = vpop.eup %1993 }
 0x399   :  { %v271_v38 = vpop.permute.xlu2 %270  ;;  %v269_v39 = vmul.f32 %v1994_v37, %v1990_v20 }
 0x39a   :  { %291 = vmatpush.msrb.mxu2 %v271_v38 }
 0x39b   :  { %1863 = vmatmul.msk.f32.vlgmr.msrb.gmra.mxu2 %vm161_vm5, %v269_v39 }
 0x39c   :  { %1867 = vmatpush.xpose.msk.msra.mxu2 %vm161_vm5, %v366_v40 }
 0x3a3   :  { %1868 = vmatmul.msk.f32.vlgmr.msra.gmra.mxu2 %vm161_vm5, %v364_v23 }
 0x3bd   :  { %v450_v35 = vpop.permute.xlu1 %449 }
 0x3be   :  { %1870 = vmatpush.xpose.msk.msrb.mxu3 %vm161_vm5, %v450_v35 }
 0x3c5   :  { %v521_v41 = vpop.permute.xlu1 %520 }
 0x3c6   :  { %1873 = vmatpush.xpose.msk.msrb.mxu2 %vm161_vm5, %v521_v41 }
 0x3cd   :  { %v519_v42 = vpop.permute.xlu1 %518 }
 0x3ce   :  { %1874 = vmatmul.msk.f32.vlgmr.msrb.gmra.mxu2 %vm161_vm5, %v519_v42 }
 0x3d2   :  { %v328_v43 = vpop.xlane.xlu2 %327 }
 0x3d3   :  { %v329_v44 = vsub.f32 %v325_v29, %v328_v43 }
 0x3d5   :  { %v330_v45 = vmul.f32 1.442695, %v329_v44  ;;  %v588_v6 = vpop.permute.xlu1 %587 }
 0x3d7   :  { %1995 = vpow2.f32 %v330_v45 }
 0x3da   :  { %v655_v46 = vpop.permute.xlu2 %654 }
 0x3db   :  { %1879 = vmatpush.xpose.msk.msra.mxu2 %vm161_vm5, %v655_v46 }
 0x3dd   :  { %v1996_v47 = vpop.eup %1995  ;;  %v586_v7 = vpop.permute.xlu1 %585 }
 0x3de   :  { %v332_v48 = vsel %vm161_vm5, %v1996_v47, 0.0 }
 0x3df   :  { %333 = vadd.xlane.f32.xlu0 %v332_v48 }
 0x3e2   :  { %v405_v50 = vpop.permute.xlu2 %404 }
 0x3e3   :  { %425 = vmatpush.msrb.mxu1 %v405_v50 }
 0x3f3   :  { %652 = vrot.lane.b32.xlu0 %v2315_v26, %s2878_s28  ;;  %s2904_s28 = smov 48  }
 0x416   :  { %v2345_v51 = vpop.f32.mrf.mxu2 }
 0x41e   :  { %v2347_v52 = vpop.f32.mrf.mxu2 }
 0x426   :  { %v388_v54 = vpop.f32.mrf.mxu2 }
 0x427   :  { %v391_v55 = vmul.f32 0.35355338, %v388_v54 }
 0x429   :  { %v392_v56 = vsel %vm2288_vm7, -1e+09, %v391_v55 }
 0x42a   :  { %v393_v57 = vsel %vm161_vm5, %v392_v56, -inf }
 0x42b   :  { %394 = vmax.xlane.f32.xlu1 %v393_v57 }
 0x451   :  { %v543_v61 = vpop.f32.mrf.mxu2 }
 0x452   :  { %v334_v63 = vpop.xlane.xlu0 %333  ;;  %v546_v1 = vmul.f32 0.35355338, %v543_v61 }
 0x453   :  { %1997 = vrcp.f32 %v334_v63 }
 0x454   :  { %v547_v2 = vsel %vm2356_vm12, -1e+09, %v546_v1 }
 0x455   :  { %v548_v3 = vsel %vm161_vm5, %v547_v2, -inf }
 0x456   :  { %549 = vmax.xlane.f32.xlu1 %v548_v3 }
 0x459   :  { %v1998_v4 = vpop.eup %1997 }
 0x45a   :  { %v336_v5 = vmul.f32 %v1998_v4, %v1996_v47 }
 0x45c   :  { %1866 = vmatmul.msk.f32.vlgmr.msra.gmra.mxu3 %vm161_vm5, %v336_v5 }
 0x45d   :  { %1876 = vmatpush.xpose.msk.msra.mxu3 %vm161_vm5, %v588_v6 }
 0x464   :  { %1871 = vmatmul.msk.f32.vlgmr.msrb.gmra.mxu3 %vm161_vm5, %v2315_v26 }
 0x465   :  { %v653_v49 = vpop.permute.xlu0 %652  ;;  %758 = vmatpush.msrb.mxu3 %v737_v58 }
 0x466   :  { %1880 = vmatmul.msk.f32.vlgmr.msra.gmra.mxu2 %vm161_vm5, %v653_v49  ;;  %v734_v49 = vld [vmem:[%s2852_s6] sm:$0xff] }
 0x467   :  { %759 = vmatpush.msrb.mxu3 %v736_v59  ;;  %v2456_v59 = vld [vmem:[%s2854_s8] ss:$0 sm:$0xff] }
 0x46c   :  { %1877 = vmatmul.msk.f32.vlgmr.msra.gmra.mxu3 %vm161_vm5, %v586_v7 }
 0x49e   :  { %v395_v9 = vpop.xlane.xlu1 %394 }
 0x49f   :  { %v396_v10 = vsub.f32 %v392_v56, %v395_v9 }
 0x4a1   :  { %v397_v11 = vmul.f32 1.442695, %v396_v10 }
 0x4a3   :  { %1999 = vpow2.f32 %v397_v11 }
 0x4a9   :  { %v2000_v12 = vpop.eup %1999 }
 0x4aa   :  { %v399_v13 = vsel %vm161_vm5, %v2000_v12, 0.0 }
 0x4ab   :  { %400 = vadd.xlane.f32.xlu0 %v399_v13 }
 0x4c9   :  { %v550_v28 = vpop.xlane.xlu1 %549 }
 0x4ca   :  { %v551_v29 = vsub.f32 %v547_v2, %v550_v28 }
 0x4cc   :  { %v552_v30 = vmul.f32 1.442695, %v551_v29 }
 0x4df   :  { %v360_v14 = vpop.f32.mrf.mxu3 }
 0x4e7   :  { %v472_v15 = vpop.f32.mrf.mxu3 }
 0x4e8   :  { %v475_v16 = vmul.f32 0.35355338, %v472_v15 }
 0x4e9   :  { %v677_v17 = vpop.f32.mrf.mxu2 }
 0x4ea   :  { %v680_v18 = vmul.f32 0.35355338, %v677_v17  ;;  %v480_v19 = vsel %vm2356_vm12, -1e+09, %v475_v16 }
 0x4eb   :  { %v481_v20 = vsel %vm161_vm5, %v480_v19, -inf }
 0x4ec   :  { %482 = vmax.xlane.f32.xlu2 %v481_v20  ;;  %v681_v21 = vsel %vm2356_vm12, -1e+09, %v680_v18 }
 0x4ed   :  { %v682_v22 = vsel %vm161_vm5, %v681_v21, -inf }
 0x4ee   :  { %683 = vmax.xlane.f32.xlu0 %v682_v22 }
 0x4ef   :  { %v610_v23 = vpop.f32.mrf.mxu3 }
 0x4f0   :  { %v613_v24 = vmul.f32 0.35355338, %v610_v23 }
 0x4f2   :  { %v614_v25 = vsel %vm2356_vm12, -1e+09, %v613_v24 }
 0x4f3   :  { %v615_v27 = vsel %vm161_vm5, %v614_v25, -inf }
 0x4f4   :  { %616 = vmax.xlane.f32.xlu1 %v615_v27 }
 0x502   :  { %626 = vrot.lane.b32.xlu0 %v2315_v26, %s2868_s30  ;;  %s2907_s30 = smov 16  }
 0x51e   :  { %v401_v31 = vpop.xlane.xlu0 %400 }
 0x51f   :  { %2001 = vrcp.f32 %v401_v31 }
 0x520   :  { %2003 = vpow2.f32 %v552_v30 }
 0x525   :  { %v2002_v32 = vpop.eup %2001 }
 0x526   :  { %v403_v33 = vmul.f32 %v2002_v32, %v2000_v12  ;;  %v2004_v34 = vpop.eup %2003 }
 0x527   :  { %v554_v37 = vsel %vm161_vm5, %v2004_v34, 0.0 }
 0x528   :  { %1869 = vmatmul.msk.f32.vlgmr.msrb.gmra.mxu1 %vm161_vm5, %v403_v33 }
 0x52c   :  { %555 = vadd.xlane.f32.xlu0 %v554_v37 }
 0x55f   :  { %v483_v38 = vpop.xlane.xlu2 %482 }
 0x560   :  { %v484_v39 = vsub.f32 %v480_v19, %v483_v38 }
 0x561   :  { %v684_v40 = vpop.xlane.xlu0 %683 }
 0x562   :  { %v485_v35 = vmul.f32 1.442695, %v484_v39  ;;  %v685_v41 = vsub.f32 %v681_v21, %v684_v40 }
 0x564   :  { %2005 = vpow2.f32 %v485_v35  ;;  %v686_v42 = vmul.f32 1.442695, %v685_v41 }
 0x566   :  { %2007 = vpow2.f32 %v686_v42 }
 0x567   :  { %v617_v43 = vpop.xlane.xlu1 %616 }
 0x568   :  { %v618_v44 = vsub.f32 %v614_v25, %v617_v43  ;;  %v826_v43 = vld [vmem:[%s2856_s10 + $0x18] sm:$0xff] }
 0x56a   :  { %v2006_v45 = vpop.eup %2005  ;;  %v619_v46 = vmul.f32 1.442695, %v618_v44  ;;  %v825_v44 = vld [vmem:[%s2856_s10 + $0x10] sm:$0xff] }
 0x56b   :  { %v487_v47 = vsel %vm161_vm5, %v2006_v45, 0.0 }
 0x56c   :  { %v2008_v48 = vpop.eup %2007  ;;  %2009 = vpow2.f32 %v619_v46  ;;  %488 = vadd.xlane.f32.xlu1 %v487_v47 }
 0x56d   :  { %v688_v50 = vsel %vm161_vm5, %v2008_v48, 0.0 }
 0x56e   :  { %689 = vadd.xlane.f32.xlu0 %v688_v50 }
 0x572   :  { %v2010_v54 = vpop.eup %2009 }
 0x573   :  { %v621_v55 = vsel %vm161_vm5, %v2010_v54, 0.0 }
 0x574   :  { %622 = vadd.xlane.f32.xlu2 %v621_v55  ;;  %v627_v57 = vpop.permute.xlu0 %626 }
 0x582   :  { %435 = vrot.lane.b32.xlu0 %v360_v14, %s2880_s24 }
 0x585   :  { %492 = vrot.lane.b32.xlu1 %v2315_v26, %s2886_s26 }
 0x58c   :  { %559 = vrot.lane.b32.xlu2 %v2315_v26, %s2110_s22 }
 0x58d   :  { %693 = vrot.lane.b32.xlu1 %v2315_v26, %s2876_s2  ;;  %v735_v26 = vld [vmem:[%s2852_s6 + $0x8] sm:$0xff] }
 0x58e   :  { %760 = vmatpush.msrb.mxu3 %v735_v26 }
 0x590   :  { %761 = vmatpush.msrb.mxu3 %v734_v49 }
 0x594   :  { %431 = vrot.lane.b32.xlu2 %v2347_v52, %s2884_s29 }
 0x59f   :  { %v556_v60 = vpop.xlane.xlu0 %555 }
 0x5a0   :  { %2011 = vrcp.f32 %v556_v60 }
 0x5a5   :  { %v427_v56 = vpop.f32.mrf.mxu1 }
 0x5a6   :  { %439 = vrot.lane.b32.xlu1 %v427_v56, %s2882_s23  ;;  %v2012_v63 = vpop.eup %2011 }
 0x5a7   :  { %v558_v1 = vmul.f32 %v2012_v63, %v2004_v34 }
 0x5df   :  { %v489_v61 = vpop.xlane.xlu1 %488 }
 0x5e0   :  { %2013 = vrcp.f32 %v489_v61 }
 0x5e1   :  { %v690_v3 = vpop.xlane.xlu0 %689 }
 0x5e2   :  { %2015 = vrcp.f32 %v690_v3  ;;  %v889_v3 = vld [vmem:[%s2858_s12 + $0x68] sm:$0xff] }
 0x5e6   :  { %v2014_v4 = vpop.eup %2013 }
 0x5e7   :  { %v623_v52 = vpop.xlane.xlu2 %622  ;;  %v491_v6 = vmul.f32 %v2014_v4, %v2006_v45  ;;  %v824_v45 = vld [vmem:[%s2856_s10 + $0x8] sm:$0xff] }
 0x5e8   :  { %2017 = vrcp.f32 %v623_v52  ;;  %v2016_v7 = vpop.eup %2015  ;;  %v2461_v52 = vld [vmem:[%s2855_s9] ss:$0 sm:$0xff] }
 0x5e9   :  { %v692_v10 = vmul.f32 %v2016_v7, %v2008_v48 }
 0x5ee   :  { %v2018_v9 = vpop.eup %2017 }
 0x5ef   :  { %v560_v2 = vpop.permute.xlu2 %559  ;;  %v625_v11 = vmul.f32 %v2018_v9, %v2010_v54  ;;  %v888_v9 = vld [vmem:[%s2858_s12 + $0x60] sm:$0xff] }
 0x5f0   :  { %580 = vmatpush.msra.mxu1 %v560_v2  ;;  %v890_v2 = vld [vmem:[%s2858_s12 + $0x70] sm:$0xff] }
 0x5f1   :  { %1875 = vmatmul.msk.f32.vlgmr.msra.gmra.mxu1 %vm161_vm5, %v558_v1  ;;  %v891_v1 = vld [vmem:[%s2858_s12 + $0x78] sm:$0xff] }
 0x5f2   :  { %894 = vmatpush.msrb.mxu2 %v891_v1 }
 0x5f4   :  { %v436_v15 = vpop.permute.xlu0 %435  ;;  %895 = vmatpush.msrb.mxu2 %v890_v2 }
 0x5f6   :  { %896 = vmatpush.msrb.mxu2 %v889_v3 }
 0x5f7   :  { %v493_v5 = vpop.permute.xlu1 %492  ;;  %v432_v13 = vpop.permute.xlu2 %431 }
 0x5f8   :  { %513 = vmatpush.msrb.mxu0 %v493_v5  ;;  %v442_v14 = vsel %vm161_vm5, %v2345_v51, %v432_v13  ;;  %v1966_v51 = vld [vmem:[%s2853_s7] ss:$0 sm:$0xff]  ;;  %897 = vmatpush.msrb.mxu2 %v888_v9 }
 0x5f9   :  { %1872 = vmatmul.msk.f32.vlgmr.msrb.gmra.mxu0 %vm161_vm5, %v491_v6  ;;  %v444_v16 = vsel %vm443_vm13, %v442_v14, %v436_v15  ;;  %v884_v13 = vld [vmem:[%s2858_s12 + $0x40] sm:$0xff]  ;;  %v883_v14 = vld [vmem:[%s2858_s12 + $0x38] sm:$0xff]  ;;  %v882_v15 = vld [vmem:[%s2858_s12 + $0x30] sm:$0xff] }
 0x5fa   :  { %647 = vmatpush.msra.mxu0 %v627_v57 }
 0x5ff   :  { %v694_v12 = vpop.permute.xlu1 %693 }
 0x600   :  { %714 = vmatpush.msrb.mxu1 %v694_v12  ;;  %v885_v12 = vld [vmem:[%s2858_s12 + $0x48] sm:$0xff] }
 0x601   :  { %1878 = vmatmul.msk.f32.vlgmr.msra.gmra.mxu0 %vm161_vm5, %v625_v11  ;;  %1881 = vmatmul.msk.f32.vlgmr.msrb.gmra.mxu1 %vm161_vm5, %v692_v10  ;;  %v887_v10 = vld [vmem:[%s2858_s12 + $0x58] sm:$0xff]  ;;  %v886_v11 = vld [vmem:[%s2858_s12 + $0x50] sm:$0xff] }
 0x602   :  { %847 = vmatpush.msra.mxu1 %v826_v43  ;;  %898 = vmatpush.msrb.mxu2 %v887_v10 }
 0x604   :  { %848 = vmatpush.msra.mxu1 %v825_v44  ;;  %899 = vmatpush.msrb.mxu2 %v886_v11 }
 0x606   :  { %849 = vmatpush.msra.mxu1 %v824_v45  ;;  %900 = vmatpush.msrb.mxu2 %v885_v12  ;;  %v1889_v12 = vld [vmem:[%s2850_s4 + $0x38] sm:$0xff] }
 0x608   :  { %901 = vmatpush.msrb.mxu2 %v884_v13  ;;  %v1888_v13 = vld [vmem:[%s2850_s4 + $0x30] sm:$0xff] }
 0x60a   :  { %902 = vmatpush.msrb.mxu2 %v883_v14  ;;  %v1887_v14 = vld [vmem:[%s2850_s4 + $0x28] sm:$0xff] }
 0x60c   :  { %903 = vmatpush.msrb.mxu2 %v882_v15 }
 0x618   :  { %v440_v17 = vpop.permute.xlu1 %439 }
 0x619   :  { %v446_v18 = vsel %vm445_vm14, %v444_v16, %v440_v17  ;;  %v881_v16 = vld [vmem:[%s2858_s12 + $0x28] sm:$0xff]  ;;  %v880_v17 = vld [vmem:[%s2858_s12 + $0x20] sm:$0xff] }
 0x61a   :  { %1882 = vmatmul.msk.f32.vlgmr.msrb.gmra.mxu3 %vm64_vm0, %v446_v18  ;;  %904 = vmatpush.msrb.mxu2 %v881_v16  ;;  %v879_v18 = vld [vmem:[%s2858_s12 + $0x18] sm:$0xff] }
 0x61c   :  { %905 = vmatpush.msrb.mxu2 %v880_v17 }
 0x61e   :  { %906 = vmatpush.msrb.mxu2 %v879_v18 }
 0x66e   :  { %v582_v19 = vpop.f32.mrf.mxu1 }
 0x66f   :  { %720 = vrot.lane.b32.xlu2 %v582_v19, %s2884_s29  ;;  %v878_v19 = vld [vmem:[%s2858_s12 + $0x10] sm:$0xff] }
 0x670   :  { %907 = vmatpush.msrb.mxu2 %v878_v19 }
 0x676   :  { %v515_v20 = vpop.f32.mrf.mxu0 }
 0x67e   :  { %v649_v21 = vpop.f32.mrf.mxu0  ;;  %v716_v22 = vpop.f32.mrf.mxu1 }
 0x67f   :  { %724 = vrot.lane.b32.xlu0 %v649_v21, %s2880_s24  ;;  %728 = vrot.lane.b32.xlu1 %v716_v22, %s2882_s23  ;;  %v876_v21 = vld [vmem:[%s2858_s12] sm:$0xff]  ;;  %s1847_s23 = sshll.u32 %s2864_s18, 4  ;;  %s1848_s23 = int_to_ptr.hbm [resolvable:$true] %s1847_s23 }
 0x680   :  { %v1969_v22 = vld [vmem:[%s2857_s11] ss:$0 sm:$0xff] }
 0x69d   :  { %v763_v23 = vpop.f32.mrf.mxu3 }
 0x69e   :  { %v764_v24 = vadd.f32 %v1966_v51, %v763_v23 }
 0x6a0   :  { %v2424_v25 = vadd.f32 %v764_v24, %v2214_v0 }
 0x6a2   :  { %v773_v27 = vsel %vm64_vm0, %v2424_v25, 0.0 }
 0x6a3   :  { %774 = vadd.xlane.f32.xlu2 %v773_v27 }
 0x6c9   :  { %v721_v28 = vpop.permute.xlu2 %720 }
 0x6ca   :  { %v731_v29 = vsel %vm161_vm5, %v515_v20, %v721_v28  ;;  %v877_v20 = vld [vmem:[%s2858_s12 + $0x8] sm:$0xff] }
 0x6cb   :  { %908 = vmatpush.msrb.mxu2 %v877_v20 }
 0x6cd   :  { %909 = vmatpush.msrb.mxu2 %v876_v21 }
 0x6f1   :  { %v725_v30 = vpop.permute.xlu0 %724  ;;  %v729_v31 = vpop.permute.xlu1 %728 }
 0x6f2   :  { %v732_v32 = vsel %vm443_vm13, %v731_v29, %v725_v30 }
 0x6f3   :  { %v733_v33 = vsel %vm445_vm14, %v732_v32, %v729_v31 }
 0x6f4   :  { %1883 = vmatmul.msk.f32.gmra.mxu3 %vm64_vm0, %v733_v33 }
 0x716   :  { %v775_v34 = vpop.xlane.xlu2 %774 }
 0x717   :  { %v779_v37 = vmul.f32 %v775_v34, %v2218_v8 }
 0x719   :  { %v781_v0 = vsub.f32 %v2424_v25, %v779_v37 }
 0x71b   :  { %v783_v38 = vmul.f32 %v781_v0, %v781_v0 }
 0x71d   :  { %v785_v39 = vsel %vm64_vm0, %v783_v38, 0.0 }
 0x71e   :  { %786 = vadd.xlane.f32.xlu0 %v785_v39 }
 0x777   :  { %v766_v40 = vpop.f32.mrf.mxu3 }
 0x778   :  { %v767_v35 = vadd.f32 %v1966_v51, %v766_v40 }
 0x77a   :  { %v2436_v41 = vadd.f32 %v767_v35, %v2270_v36  ;;  %v823_v36 = vld [vmem:[%s2856_s10] sm:$0xff] }
 0x77b   :  { %850 = vmatpush.msra.mxu1 %v823_v36 }
 0x77c   :  { %v776_v42 = vsel %vm64_vm0, %v2436_v41, 0.0 }
 0x77d   :  { %777 = vadd.xlane.f32.xlu1 %v776_v42  ;;  %996 = vmatpush.msrb.mxu1 %v1889_v12 }
 0x77f   :  { %997 = vmatpush.msrb.mxu1 %v1888_v13 }
 0x781   :  { %998 = vmatpush.msrb.mxu1 %v1887_v14 }
 0x791   :  { %v787_v46 = vpop.xlane.xlu0 %786 }
 0x792   :  { %v791_v47 = vmul.f32 %v787_v46, %v2218_v8 }
 0x794   :  { %v793_v48 = vadd.f32 1e-05, %v791_v47 }
 0x796   :  { %2019 = vrsqrt.f32 %v793_v48  ;;  %vm801_vm1 = vweird.f32 %v793_v48 }
 0x79c   :  { %v2020_v50 = vpop.eup %2019 }
 0x79d   :  { %v796_v54 = vmul.f32 %v2020_v50, %v793_v48  ;;  %vm802_vm15 = vweird.f32 %v2020_v50  ;;  %v1970_v48 = vld [vmem:[%s2859_s13] ss:$0 sm:$0xff] }
 0x79e   :  { %vm803_vm2 = vmor %vm801_vm1, %vm802_vm15 }
 0x79f   :  { %v797_v55 = vmul.f32 %v2020_v50, %v796_v54 }
 0x7a1   :  { %v798_v56 = vmul.f32 0.5, %v797_v55 }
 0x7a3   :  { %v799_v57 = vsub.f32 1.5, %v798_v56 }
 0x7a5   :  { %v800_v58 = vmul.f32 %v2020_v50, %v799_v57 }
 0x7a7   :  { %v804_v60 = vsel %vm803_vm2, %v2020_v50, %v800_v58 }
 0x7a8   :  { %v815_v26 = vmul.f32 %v804_v60, %v781_v0 }
 0x7aa   :  { %v818_v61 = vmul.f32 %v2456_v59, %v815_v26 }
 0x7ac   :  { %v821_v63 = vadd.f32 %v2461_v52, %v818_v61 }
 0x7ae   :  { %1884 = vmatmul.msk.f32.vlgmr.msra.gmra.mxu1 %vm64_vm0, %v821_v63 }
 0x7f0   :  { %v778_v4 = vpop.xlane.xlu1 %777 }
 0x7f1   :  { %v780_v5 = vmul.f32 %v778_v4, %v2218_v8 }
 0x7f3   :  { %v782_v6 = vsub.f32 %v2436_v41, %v780_v5 }
 0x7f5   :  { %v784_v49 = vmul.f32 %v782_v6, %v782_v6 }
 0x7f7   :  { %v788_v7 = vsel %vm64_vm0, %v784_v49, 0.0 }
 0x7f8   :  { %789 = vadd.xlane.f32.xlu2 %v788_v7 }
 0x82b   :  { %v852_v51 = vpop.f32.mrf.mxu1 }
 0x82c   :  { %v853_v23 = vadd.f32 %v1969_v22, %v852_v51 }
 0x82e   :  { %v858_v24 = vmul.f32 %v853_v23, %v853_v23 }
 0x830   :  { %v860_v27 = vmul.f32 %v858_v24, %v853_v23 }
 0x832   :  { %v862_v28 = vmul.f32 0.044715, %v860_v27 }
 0x834   :  { %v864_v29 = vadd.f32 %v862_v28, %v853_v23  ;;  %v1972_v28 = vld [vmem:[%s2849_s3 + $0x1] ss:$0 sm:$0xff]  ;;  %s2898_s3 = smov 64  }
 0x836   :  { %v866_v30 = vmul.f32 0.7978846, %v864_v29 }
 0x838   :  { %2021 = vtanh.f32 %v866_v30 }
 0x83e   :  { %v2022_v31 = vpop.eup %2021 }
 0x83f   :  { %v870_v32 = vadd.f32 1.0, %v2022_v31 }
 0x841   :  { %v872_v33 = vmul.f32 0.5, %v870_v32 }
 0x843   :  { %v874_v34 = vmul.f32 %v872_v33, %v853_v23  ;;  %v1971_v23 = vld [vmem:[%s2892_s25 + $0x1] ss:$0 sm:$0xff] }
 0x845   :  { %910 = vmatmul.f32.vlgmr.msrb.gmra.mxu2 %v874_v34 }
 0x86b   :  { %v790_v37 = vpop.xlane.xlu2 %789 }
 0x86c   :  { %v792_v0 = vmul.f32 %v790_v37, %v2218_v8 }
 0x86e   :  { %v794_v38 = vadd.f32 1e-05, %v792_v0  ;;  %v1973_v0 = vld [vmem:[%s2851_s5 + $0x1] ss:$0 sm:$0xff]  ;;  %s2899_s5 = smov 104  }
 0x870   :  { %2023 = vrsqrt.f32 %v794_v38  ;;  %vm811_vm4 = vweird.f32 %v794_v38 }
 0x876   :  { %v2024_v39 = vpop.eup %2023 }
 0x877   :  { %v806_v40 = vmul.f32 %v2024_v39, %v794_v38  ;;  %vm812_vm3 = vweird.f32 %v2024_v39 }
 0x878   :  { %vm813_vm6 = vmor %vm811_vm4, %vm812_vm3  ;;  %vm1765_vm3 = vcmask 1040384   ;;  %vm1838_vm4 = vcmask 254976  }
 0x879   :  { %v807_v35 = vmul.f32 %v2024_v39, %v806_v40 }
 0x87b   :  { %v808_v42 = vmul.f32 0.5, %v807_v35 }
 0x87d   :  { %v809_v43 = vsub.f32 1.5, %v808_v42 }
 0x87f   :  { %v810_v44 = vmul.f32 %v2024_v39, %v809_v43 }
 0x881   :  { %v814_v45 = vsel %vm813_vm6, %v2024_v39, %v810_v44 }
 0x882   :  { %v816_v36 = vmul.f32 %v814_v45, %v782_v6 }
 0x884   :  { %v819_v46 = vmul.f32 %v2456_v59, %v816_v36 }
 0x886   :  { %v822_v47 = vadd.f32 %v2461_v52, %v819_v46 }
 0x888   :  { %1885 = vmatmul.msk.f32.gmra.mxu1 %vm64_vm0, %v822_v47 }
 0x8c8   :  { %v911_v50 = vpop.f32.mrf.mxu2 }
 0x8c9   :  { %v912_v54 = vadd.f32 %v1970_v48, %v911_v50 }
 0x8cb   :  { %v2528_v55 = vadd.f32 %v912_v54, %v2424_v25 }
 0x8cd   :  { %v921_v56 = vsel %vm64_vm0, %v2528_v55, 0.0 }
 0x8ce   :  { %922 = vadd.xlane.f32.xlu0 %v921_v56 }
 0x905   :  { %v855_v57 = vpop.f32.mrf.mxu1 }
 0x906   :  { %v856_v58 = vadd.f32 %v1969_v22, %v855_v57 }
 0x908   :  { %v859_v59 = vmul.f32 %v856_v58, %v856_v58 }
 0x90a   :  { %v861_v60 = vmul.f32 %v859_v59, %v856_v58 }
 0x90c   :  { %v863_v26 = vmul.f32 0.044715, %v861_v60 }
 0x90e   :  { %v865_v52 = vadd.f32 %v863_v26, %v856_v58 }
 0x910   :  { %v867_v61 = vmul.f32 0.7978846, %v865_v52 }
 0x912   :  { %2025 = vtanh.f32 %v867_v61 }
 0x918   :  { %v2026_v63 = vpop.eup %2025 }
 0x919   :  { %v871_v1 = vadd.f32 1.0, %v2026_v63 }
 0x91b   :  { %v873_v2 = vmul.f32 0.5, %v871_v1 }
 0x91d   :  { %v875_v3 = vmul.f32 %v873_v2, %v856_v58 }
 0x91f   :  { %913 = vmatmul.f32.gmra.mxu2 %v875_v3 }
 0x941   :  { %v923_v4 = vpop.xlane.xlu0 %922 }
 0x942   :  { %v927_v25 = vmul.f32 %v923_v4, %v2218_v8 }
 0x944   :  { %v929_v5 = vsub.f32 %v2528_v55, %v927_v25 }
 0x946   :  { %v931_v6 = vmul.f32 %v929_v5, %v929_v5 }
 0x948   :  { %v933_v49 = vsel %vm64_vm0, %v931_v6, 0.0 }
 0x949   :  { %934 = vadd.xlane.f32.xlu1 %v933_v49 }
 0x9a2   :  { %v914_v7 = vpop.f32.mrf.mxu2 }
 0x9a3   :  { %v915_v9 = vadd.f32 %v1970_v48, %v914_v7 }
 0x9a5   :  { %v2536_v10 = vadd.f32 %v915_v9, %v2436_v41  ;;  %v1886_v41 = vld [vmem:[%s2850_s4 + $0x20] sm:$0xff] }
 0x9a6   :  { %999 = vmatpush.msrb.mxu1 %v1886_v41 }
 0x9a7   :  { %v924_v11 = vsel %vm64_vm0, %v2536_v10, 0.0 }
 0x9a8   :  { %925 = vadd.xlane.f32.xlu2 %v924_v11 }
 0x9bc   :  { %v935_v15 = vpop.xlane.xlu1 %934 }
 0x9bd   :  { %v939_v16 = vmul.f32 %v935_v15, %v2218_v8 }
 0x9bf   :  { %v941_v17 = vadd.f32 1e-05, %v939_v16 }
 0x9c1   :  { %2027 = vrsqrt.f32 %v941_v17  ;;  %vm949_vm9 = vweird.f32 %v941_v17 }
 0x9c7   :  { %v2028_v18 = vpop.eup %2027 }
 0x9c8   :  { %v944_v19 = vmul.f32 %v2028_v18, %v941_v17  ;;  %vm950_vm8 = vweird.f32 %v2028_v18 }
 0x9c9   :  { %vm951_vm10 = vmor %vm949_vm9, %vm950_vm8 }
 0x9ca   :  { %v945_v20 = vmul.f32 %v2028_v18, %v944_v19 }
 0x9cc   :  { %v946_v21 = vmul.f32 0.5, %v945_v20 }
 0x9ce   :  { %v947_v22 = vsub.f32 1.5, %v946_v21 }
 0x9d0   :  { %v948_v51 = vmul.f32 %v2028_v18, %v947_v22 }
 0x9d2   :  { %v952_v24 = vsel %vm951_vm10, %v2028_v18, %v948_v51 }
 0x9d3   :  { %v963_v27 = vmul.f32 %v952_v24, %v929_v5 }
 0x9d5   :  { %v966_v29 = vmul.f32 %v1971_v23, %v963_v27 }
 0x9d7   :  { %v969_v30 = vadd.f32 %v1972_v28, %v966_v29 }
 0x9d9   :  { %1890 = vmatmul.msk.f32.vlgmr.msrb.gmra.mxu1 %vm64_vm0, %v969_v30 }
 0xa1b   :  { %v926_v31 = vpop.xlane.xlu2 %925 }
 0xa1c   :  { %v928_v32 = vmul.f32 %v926_v31, %v2218_v8 }
 0xa1e   :  { %v930_v33 = vsub.f32 %v2536_v10, %v928_v32 }
 0xa20   :  { %v932_v34 = vmul.f32 %v930_v33, %v930_v33 }
 0xa22   :  { %v936_v37 = vsel %vm64_vm0, %v932_v34, 0.0 }
 0xa23   :  { %937 = vadd.xlane.f32.xlu0 %v936_v37 }
 0xa56   :  { %v1001_v38 = vpop.f32.mrf.mxu1 }
 0xa57   :  { %v2566_v39 = vadd.f32 %v1973_v0, %v1001_v38 }
 0xa59   :  { %1073 = vrot.lane.b32.xlu0 %v2566_v39, %s2101_s19  ;;  %1075 = vrot.lane.b32.xlu2 %v2566_v39, %s2103_s20 }
 0xa5a   :  { %1008 = vrot.lane.b32.xlu1 %v2566_v39, %s2102_s1 }
 0xa61   :  { %1114 = vrot.lane.b32.xlu2 %v2566_v39, %s2110_s22 }
 0xa96   :  { %v938_v40 = vpop.xlane.xlu0 %937 }
 0xa97   :  { %v940_v35 = vmul.f32 %v938_v40, %v2218_v8 }
 0xa99   :  { %v942_v42 = vadd.f32 1e-05, %v940_v35 }
 0xa9b   :  { %2029 = vrsqrt.f32 %v942_v42  ;;  %vm959_vm15 = vweird.f32 %v942_v42 }
 0xaa1   :  { %v2030_v43 = vpop.eup %2029 }
 0xaa2   :  { %v954_v44 = vmul.f32 %v2030_v43, %v942_v42  ;;  %vm960_vm11 = vweird.f32 %v2030_v43 }
 0xaa3   :  { %vm961_vm1 = vmor %vm959_vm15, %vm960_vm11 }
 0xaa4   :  { %v955_v45 = vmul.f32 %v2030_v43, %v954_v44 }
 0xaa6   :  { %v956_v36 = vmul.f32 0.5, %v955_v45 }
 0xaa8   :  { %v957_v46 = vsub.f32 1.5, %v956_v36 }
 0xaaa   :  { %v958_v47 = vmul.f32 %v2030_v43, %v957_v46 }
 0xaac   :  { %v962_v48 = vsel %vm961_vm1, %v2030_v43, %v958_v47 }
 0xaad   :  { %v964_v50 = vmul.f32 %v962_v48, %v930_v33 }
 0xaaf   :  { %v967_v54 = vmul.f32 %v1971_v23, %v964_v50 }
 0xab1   :  { %v970_v56 = vadd.f32 %v1972_v28, %v967_v54 }
 0xab3   :  { %1891 = vmatmul.msk.f32.gmra.mxu1 %vm64_vm0, %v970_v56  ;;  %v1076_v57 = vpop.permute.xlu2 %1075 }
 0xab4   :  { %1895 = vmatpush.xpose.msk.msra.mxu1 %vm161_vm5, %v1076_v57 }
 0xabb   :  { %v1115_v60 = vpop.permute.xlu2 %1114 }
 0xacb   :  { %v1074_v58 = vpop.permute.xlu0 %1073 }
 0xacc   :  { %v1009_v59 = vpop.permute.xlu1 %1008  ;;  %1896 = vmatmul.msk.f32.vlgmr.msra.gmra.mxu1 %vm161_vm5, %v1074_v58 }
 0xacd   :  { %1892 = vmatpush.xpose.msk.msra.mxu3 %vm161_vm5, %v1009_v59 }
 0xad0   :  { %1893 = vmatmul.msk.f32.vlgmr.msra.gmra.mxu3 %vm161_vm5, %v2566_v39 }
 0xad1   :  { %1135 = vmatpush.msrb.mxu3 %v1115_v60 }
 0xb30   :  { %v1004_v26 = vpop.f32.mrf.mxu1 }
 0xb31   :  { %v2597_v5 = vadd.f32 %v1973_v0, %v1004_v26 }
 0xb49   :  { %v1098_v52 = vpop.f32.mrf.mxu1 }
 0xb4a   :  { %v1101_v61 = vmul.f32 0.35355338, %v1098_v52 }
 0xb4c   :  { %v1102_v63 = vsel %vm2288_vm7, -1e+09, %v1101_v61 }
 0xb4d   :  { %v1103_v1 = vsel %vm161_vm5, %v1102_v63, -inf }
 0xb4e   :  { %1104 = vmax.xlane.f32.xlu1 %v1103_v1 }
 0xb53   :  { %v1031_v2 = vpop.f32.mrf.mxu3 }
 0xb54   :  { %v1034_v3 = vmul.f32 0.35355338, %v1031_v2 }
 0xb56   :  { %v1035_v4 = vsel %vm2288_vm7, -1e+09, %v1034_v3 }
 0xb57   :  { %v1036_v25 = vsel %vm161_vm5, %v1035_v4, -inf }
 0xb58   :  { %1037 = vmax.xlane.f32.xlu0 %v1036_v25 }
 0xb6c   :  { %1047 = vrot.lane.b32.xlu0 %v2566_v39, %s2898_s3 }
 0xb74   :  { %1207 = vrot.lane.b32.xlu0 %v2566_v39, %s2899_s5 }
 0xb7c   :  { %1140 = vrot.lane.b32.xlu0 %v2566_v39, %s2900_s0 }
 0xb84   :  { %1248 = vrot.lane.b32.xlu0 %v2566_v39, %s2901_s21 }
 0xb8c   :  { %1355 = vrot.lane.b32.xlu0 %v2597_v5, %s2101_s19  ;;  %s2903_s19 = smov 72  }
 0xbc1   :  { %v1105_v6 = vpop.xlane.xlu1 %1104 }
 0xbc2   :  { %v1106_v49 = vsub.f32 %v1102_v63, %v1105_v6 }
 0xbc4   :  { %v1107_v7 = vmul.f32 1.442695, %v1106_v49 }
 0xbc6   :  { %2031 = vpow2.f32 %v1107_v7 }
 0xbcb   :  { %v1038_v9 = vpop.xlane.xlu0 %1037 }
 0xbcc   :  { %v2032_v11 = vpop.eup %2031  ;;  %v1039_v12 = vsub.f32 %v1035_v4, %v1038_v9 }
 0xbcd   :  { %v1109_v13 = vsel %vm161_vm5, %v2032_v11, 0.0 }
 0xbce   :  { %v1040_v14 = vmul.f32 1.442695, %v1039_v12  ;;  %1110 = vadd.xlane.f32.xlu2 %v1109_v13 }
 0xbd0   :  { %2033 = vpow2.f32 %v1040_v14 }
 0xbd6   :  { %v2034_v41 = vpop.eup %2033 }
 0xbd7   :  { %v1042_v15 = vsel %vm161_vm5, %v2034_v41, 0.0 }
 0xbd8   :  { %1043 = vadd.xlane.f32.xlu1 %v1042_v15 }
 0xbde   :  { %v1048_v16 = vpop.permute.xlu0 %1047 }
 0xbdf   :  { %1068 = vmatpush.msrb.mxu0 %v1048_v16 }
 0xbe6   :  { %1142 = vrot.lane.b32.xlu2 %v2566_v39, %s2902_s27  ;;  %v1208_v17 = vpop.permute.xlu0 %1207 }
 0xbee   :  { %v1141_v22 = vpop.permute.xlu0 %1140 }
 0xbf1   :  { %1209 = vrot.lane.b32.xlu1 %v2566_v39, %s2903_s19 }
 0xbf6   :  { %v1249_v27 = vpop.permute.xlu0 %1248 }
 0xbfe   :  { %v1356_v56 = vpop.permute.xlu0 %1355 }
 0xc41   :  { %v1111_v18 = vpop.xlane.xlu2 %1110 }
 0xc42   :  { %2035 = vrcp.f32 %v1111_v18 }
 0xc48   :  { %v2036_v19 = vpop.eup %2035 }
 0xc49   :  { %v1113_v20 = vmul.f32 %v2036_v19, %v2032_v11  ;;  %v1143_v21 = vpop.permute.xlu2 %1142 }
 0xc4a   :  { %1898 = vmatpush.xpose.msk.msra.mxu0 %vm161_vm5, %v1143_v21 }
 0xc4b   :  { %v1044_v51 = vpop.xlane.xlu1 %1043  ;;  %1897 = vmatmul.msk.f32.vlgmr.msrb.gmra.mxu3 %vm161_vm5, %v1113_v20 }
 0xc4c   :  { %2037 = vrcp.f32 %v1044_v51 }
 0xc52   :  { %v2038_v23 = vpop.eup %2037 }
 0xc53   :  { %v1046_v24 = vmul.f32 %v2038_v23, %v2034_v41 }
 0xc55   :  { %1894 = vmatmul.msk.f32.vlgmr.msrb.gmra.mxu0 %vm161_vm5, %v1046_v24 }
 0xc56   :  { %1269 = vmatpush.msrb.mxu0 %v1249_v27 }
 0xc5d   :  { %1899 = vmatmul.msk.f32.vlgmr.msra.gmra.mxu0 %vm161_vm5, %v1141_v22 }
 0xc63   :  { %v1210_v28 = vpop.permute.xlu1 %1209 }
 0xc64   :  { %1901 = vmatpush.xpose.msk.msra.mxu3 %vm161_vm5, %v1210_v28 }
 0xc67   :  { %1902 = vmatmul.msk.f32.vlgmr.msra.gmra.mxu3 %vm161_vm5, %v1208_v17 }
 0xcce   :  { %v2618_v34 = vpop.f32.mrf.mxu3 }
 0xcd2   :  { %v2613_v29 = vpop.f32.mrf.mxu0 }
 0xcda   :  { %v1165_v30 = vpop.f32.mrf.mxu0 }
 0xcdb   :  { %v1168_v31 = vmul.f32 0.35355338, %v1165_v30 }
 0xcdd   :  { %v1169_v32 = vsel %vm2288_vm7, -1e+09, %v1168_v31 }
 0xcde   :  { %v1170_v33 = vsel %vm161_vm5, %v1169_v32, -inf }
 0xcdf   :  { %1171 = vmax.xlane.f32.xlu1 %v1170_v33 }
 0xcea   :  { %v1232_v37 = vpop.f32.mrf.mxu3 }
 0xceb   :  { %v1235_v0 = vmul.f32 0.35355338, %v1232_v37 }
 0xced   :  { %v1236_v38 = vsel %vm2288_vm7, -1e+09, %v1235_v0 }
 0xcee   :  { %v1237_v40 = vsel %vm161_vm5, %v1236_v38, -inf }
 0xcef   :  { %1238 = vmax.xlane.f32.xlu2 %v1237_v40 }
 0xcf8   :  { %1290 = vrot.lane.b32.xlu1 %v2597_v5, %s2102_s1  ;;  %s2905_s1 = smov 8  }
 0xd07   :  { %1181 = vrot.lane.b32.xlu2 %v2566_v39, %s2904_s28 }
 0xd0f   :  { %1357 = vrot.lane.b32.xlu2 %v2597_v5, %s2103_s20  ;;  %s2906_s20 = smov 24  }
 0xd17   :  { %1424 = vrot.lane.b32.xlu2 %v2597_v5, %s2902_s27 }
 0xd1f   :  { %1489 = vrot.lane.b32.xlu2 %v2597_v5, %s2899_s5 }
 0xd52   :  { %v1172_v53 = vpop.xlane.xlu1 %1171 }
 0xd53   :  { %v1173_v35 = vsub.f32 %v1169_v32, %v1172_v53 }
 0xd55   :  { %v1174_v42 = vmul.f32 1.442695, %v1173_v35 }
 0xd57   :  { %2039 = vpow2.f32 %v1174_v42 }
 0xd5d   :  { %v2040_v43 = vpop.eup %2039 }
 0xd5e   :  { %v1176_v44 = vsel %vm161_vm5, %v2040_v43, 0.0 }
 0xd5f   :  { %1177 = vadd.xlane.f32.xlu0 %v1176_v44 }
 0xd62   :  { %v1239_v45 = vpop.xlane.xlu2 %1238 }
 0xd63   :  { %v1240_v36 = vsub.f32 %v1236_v38, %v1239_v45 }
 0xd65   :  { %v1241_v39 = vmul.f32 1.442695, %v1240_v36  ;;  %v1919_v36 = vld [vmem:[%s2852_s6 + $0x38] sm:$0xff] }
 0xd67   :  { %2041 = vpow2.f32 %v1241_v39  ;;  %v1917_v39 = vld [vmem:[%s2852_s6 + $0x28] sm:$0xff] }
 0xd6a   :  { %v1182_v46 = vpop.permute.xlu2 %1181  ;;  %v1291_v47 = vpop.permute.xlu1 %1290 }
 0xd6b   :  { %1202 = vmatpush.msrb.mxu1 %v1182_v46 }
 0xd6d   :  { %1904 = vmatpush.xpose.msk.msra.mxu1 %vm161_vm5, %v1291_v47  ;;  %v2042_v48 = vpop.eup %2041 }
 0xd6e   :  { %v1243_v50 = vsel %vm161_vm5, %v2042_v48, 0.0 }
 0xd6f   :  { %1244 = vadd.xlane.f32.xlu1 %v1243_v50 }
 0xd72   :  { %v1358_v54 = vpop.permute.xlu2 %1357 }
 0xd73   :  { %1907 = vmatpush.xpose.msk.msra.mxu0 %vm161_vm5, %v1358_v54  ;;  %1422 = vrot.lane.b32.xlu0 %v2597_v5, %s2900_s0 }
 0xd7a   :  { %v1425_v60 = vpop.permute.xlu2 %1424 }
 0xd82   :  { %v1490_v2 = vpop.permute.xlu2 %1489 }
 0xd88   :  { %1491 = vrot.lane.b32.xlu1 %v2597_v5, %s2903_s19 }
 0xdd2   :  { %v1178_v57 = vpop.xlane.xlu0 %1177 }
 0xdd3   :  { %2043 = vrcp.f32 %v1178_v57 }
 0xdd9   :  { %v2044_v58 = vpop.eup %2043 }
 0xdda   :  { %v1180_v59 = vmul.f32 %v2044_v58, %v2040_v43 }
 0xddc   :  { %1900 = vmatmul.msk.f32.vlgmr.msrb.gmra.mxu1 %vm161_vm5, %v1180_v59 }
 0xddd   :  { %1910 = vmatpush.xpose.msk.msrb.mxu1 %vm161_vm5, %v1425_v60 }
 0xde2   :  { %v1245_v26 = vpop.xlane.xlu1 %1244 }
 0xde3   :  { %2045 = vrcp.f32 %v1245_v26 }
 0xde4   :  { %1905 = vmatmul.msk.f32.vlgmr.msra.gmra.mxu1 %vm161_vm5, %v2597_v5 }
 0xde5   :  { %v1423_v63 = vpop.permute.xlu0 %1422  ;;  %1596 = vmatpush.msra.mxu1 %v1919_v36 }
 0xde9   :  { %v2046_v52 = vpop.eup %2045 }
 0xdea   :  { %v1247_v61 = vmul.f32 %v2046_v52, %v2042_v48 }
 0xdec   :  { %1903 = vmatmul.msk.f32.vlgmr.msrb.gmra.mxu0 %vm161_vm5, %v1247_v61  ;;  %1911 = vmatmul.msk.f32.vlgmr.msrb.gmra.mxu1 %vm161_vm5, %v1423_v63 }
 0xdf4   :  { %1908 = vmatmul.msk.f32.vlgmr.msra.gmra.mxu0 %vm161_vm5, %v1356_v56 }
 0xdfa   :  { %v1492_v1 = vpop.permute.xlu1 %1491 }
 0xdfb   :  { %1913 = vmatpush.xpose.msk.msrb.mxu0 %vm161_vm5, %v1492_v1 }
 0xdfe   :  { %1914 = vmatmul.msk.f32.vlgmr.msrb.gmra.mxu0 %vm161_vm5, %v1490_v2 }
 0xe59   :  { %v1204_v3 = vpop.f32.mrf.mxu1 }
 0xe61   :  { %v1313_v4 = vpop.f32.mrf.mxu1 }
 0xe62   :  { %v1316_v25 = vmul.f32 0.35355338, %v1313_v4 }
 0xe64   :  { %v1317_v6 = vsel %vm2356_vm12, -1e+09, %v1316_v25 }
 0xe65   :  { %v1318_v49 = vsel %vm161_vm5, %v1317_v6, -inf }
 0xe66   :  { %1319 = vmax.xlane.f32.xlu1 %v1318_v49 }
 0xe69   :  { %v1271_v7 = vpop.f32.mrf.mxu0  ;;  %v1447_v9 = vpop.f32.mrf.mxu1 }
 0xe6a   :  { %v1450_v11 = vmul.f32 0.35355338, %v1447_v9 }
 0xe6c   :  { %v1451_v12 = vsel %vm2356_vm12, -1e+09, %v1450_v11 }
 0xe6d   :  { %v1452_v13 = vsel %vm161_vm5, %v1451_v12, -inf }
 0xe6e   :  { %1453 = vmax.xlane.f32.xlu2 %v1452_v13 }
 0xe71   :  { %v1380_v14 = vpop.f32.mrf.mxu0 }
 0xe72   :  { %v1383_v41 = vmul.f32 0.35355338, %v1380_v14 }
 0xe74   :  { %v1384_v15 = vsel %vm2356_vm12, -1e+09, %v1383_v41 }
 0xe75   :  { %v1385_v16 = vsel %vm161_vm5, %v1384_v15, -inf }
 0xe76   :  { %1386 = vmax.xlane.f32.xlu0 %v1385_v16 }
 0xe7b   :  { %v1514_v17 = vpop.f32.mrf.mxu0 }
 0xe7c   :  { %v1517_v18 = vmul.f32 0.35355338, %v1514_v17 }
 0xe7e   :  { %v1518_v19 = vsel %vm2356_vm12, -1e+09, %v1517_v18 }
 0xe7f   :  { %v1519_v20 = vsel %vm161_vm5, %v1518_v19, -inf }
 0xe80   :  { %1520 = vmax.xlane.f32.xlu1 %v1519_v20 }
 0xe8a   :  { %1329 = vrot.lane.b32.xlu0 %v2597_v5, %s2898_s3 }
 0xed9   :  { %v1320_v21 = vpop.xlane.xlu1 %1319 }
 0xeda   :  { %v1321_v22 = vsub.f32 %v1317_v6, %v1320_v21 }
 0xedc   :  { %v1322_v51 = vmul.f32 1.442695, %v1321_v22 }
 0xede   :  { %2047 = vpow2.f32 %v1322_v51 }
 0xee1   :  { %v1454_v23 = vpop.xlane.xlu2 %1453 }
 0xee2   :  { %v1455_v24 = vsub.f32 %v1451_v12, %v1454_v23 }
 0xee4   :  { %v2048_v27 = vpop.eup %2047  ;;  %v1456_v28 = vmul.f32 1.442695, %v1455_v24 }
 0xee5   :  { %v1324_v30 = vsel %vm161_vm5, %v2048_v27, 0.0 }
 0xee6   :  { %2049 = vpow2.f32 %v1456_v28  ;;  %1325 = vadd.xlane.f32.xlu0 %v1324_v30 }
 0xee9   :  { %v1387_v62 = vpop.xlane.xlu0 %1386 }
 0xeea   :  { %v1388_v31 = vsub.f32 %v1384_v15, %v1387_v62  ;;  %v1925_v62 = vld [vmem:[%s2856_s10 + $0x38] sm:$0xff] }
 0xeec   :  { %v2050_v32 = vpop.eup %2049  ;;  %v1389_v33 = vmul.f32 1.442695, %v1388_v31  ;;  %v1924_v31 = vld [vmem:[%s2856_s10 + $0x30] sm:$0xff] }
 0xeed   :  { %v1458_v37 = vsel %vm161_vm5, %v2050_v32, 0.0 }
 0xeee   :  { %2051 = vpow2.f32 %v1389_v33  ;;  %1459 = vadd.xlane.f32.xlu1 %v1458_v37 }
 0xef3   :  { %v1521_v0 = vpop.xlane.xlu1 %1520 }
 0xef4   :  { %v2052_v38 = vpop.eup %2051  ;;  %v1522_v40 = vsub.f32 %v1518_v19, %v1521_v0 }
 0xef5   :  { %v1391_v53 = vsel %vm161_vm5, %v2052_v38, 0.0 }
 0xef6   :  { %v1523_v35 = vmul.f32 1.442695, %v1522_v40  ;;  %1392 = vadd.xlane.f32.xlu2 %v1391_v53 }
 0xef8   :  { %2053 = vpow2.f32 %v1523_v35 }
 0xefa   :  { %1530 = vrot.lane.b32.xlu0 %v2597_v5, %s2901_s21 }
 0xefc   :  { %v1330_v42 = vpop.permute.xlu0 %1329 }
 0xefd   :  { %1350 = vmatpush.msrb.mxu3 %v1330_v42 }
 0xefe   :  { %v2054_v43 = vpop.eup %2053 }
 0xeff   :  { %v1525_v44 = vsel %vm161_vm5, %v2054_v43, 0.0 }
 0xf00   :  { %1526 = vadd.xlane.f32.xlu2 %v1525_v44  ;;  %v2738_v44 = vld [vmem:[%s2854_s8 + $0x1] ss:$0 sm:$0xff] }
 0xf02   :  { %1275 = vrot.lane.b32.xlu0 %v2618_v34, %s2905_s1  ;;  %v1918_v34 = vld [vmem:[%s2852_s6 + $0x30] sm:$0xff] }
 0xf03   :  { %1597 = vmatpush.msra.mxu1 %v1918_v34  ;;  %v2743_v34 = vld [vmem:[%s2855_s9 + $0x1] ss:$0 sm:$0xff] }
 0xf05   :  { %1598 = vmatpush.msra.mxu1 %v1917_v39 }
 0xf07   :  { %1396 = vrot.lane.b32.xlu1 %v2597_v5, %s2110_s22  ;;  %s2115_s22 = smov [#allocation2]  }
 0xf0a   :  { %1283 = vrot.lane.b32.xlu0 %v1271_v7, %s2906_s20 }
 0xf0f   :  { %1279 = vrot.lane.b32.xlu1 %v1204_v3, %s2907_s30 }
 0xf18   :  { %1463 = vrot.lane.b32.xlu2 %v2597_v5, %s2904_s28  ;;  %v1916_v5 = vld [vmem:[%s2852_s6 + $0x20] sm:$0xff] }
 0xf19   :  { %1599 = vmatpush.msra.mxu1 %v1916_v5  ;;  %v1942_v5 = vld [vmem:[%s2858_s12 + $0xf0] sm:$0xff] }
 0xf59   :  { %v1326_v45 = vpop.xlane.xlu0 %1325 }
 0xf5a   :  { %2055 = vrcp.f32 %v1326_v45 }
 0xf60   :  { %v2056_v46 = vpop.eup %2055 }
 0xf61   :  { %v1328_v47 = vmul.f32 %v2056_v46, %v2048_v27  ;;  %v1460_v54 = vpop.xlane.xlu1 %1459 }
 0xf63   :  { %1906 = vmatmul.msk.f32.vlgmr.msrb.gmra.mxu3 %vm161_vm5, %v1328_v47  ;;  %v1943_v47 = vld [vmem:[%s2858_s12 + $0xf8] sm:$0xff] }
 0xf64   :  { %1734 = vmatpush.msra.mxu0 %v1943_v47  ;;  %v1978_v47 = vld [vmem:[%s2859_s13 + $0x1] ss:$0 sm:$0xff] }
 0xf66   :  { %1735 = vmatpush.msra.mxu0 %v1942_v5 }
 0xf69   :  { %v1393_v48 = vpop.xlane.xlu2 %1392 }
 0xf6a   :  { %2057 = vrcp.f32 %v1393_v48  ;;  %v1941_v48 = vld [vmem:[%s2858_s12 + $0xe8] sm:$0xff] }
 0xf6b   :  { %2059 = vrcp.f32 %v1460_v54  ;;  %1736 = vmatpush.msra.mxu0 %v1941_v48 }
 0xf6c   :  { %v1531_v50 = vpop.permute.xlu0 %1530 }
 0xf70   :  { %v2058_v57 = vpop.eup %2057 }
 0xf71   :  { %v2060_v58 = vpop.eup %2059  ;;  %v1395_v60 = vmul.f32 %v2058_v57, %v2052_v38 }
 0xf72   :  { %v1462_v52 = vmul.f32 %v2060_v58, %v2050_v32  ;;  %v1923_v32 = vld [vmem:[%s2856_s10 + $0x28] sm:$0xff] }
 0xf73   :  { %v1527_v56 = vpop.xlane.xlu2 %1526 }
 0xf74   :  { %2061 = vrcp.f32 %v1527_v56  ;;  %v1276_v59 = vpop.permute.xlu0 %1275 }
 0xf75   :  { %v1286_v2 = vsel %vm161_vm5, %v2613_v29, %v1276_v59  ;;  %v1974_v29 = vld [vmem:[%s2853_s7 + $0x1] ss:$0 sm:$0xff] }
 0xf76   :  { %v1940_v59 = vld [vmem:[%s2858_s12 + $0xe0] sm:$0xff] }
 0xf77   :  { %1737 = vmatpush.msra.mxu0 %v1940_v59 }
 0xf79   :  { %v1397_v26 = vpop.permute.xlu1 %1396 }
 0xf7a   :  { %1417 = vmatpush.msra.mxu2 %v1397_v26  ;;  %v2062_v63 = vpop.eup %2061  ;;  %v1938_v26 = vld [vmem:[%s2858_s12 + $0xd0] sm:$0xff] }
 0xf7b   :  { %v1464_v61 = vpop.permute.xlu2 %1463  ;;  %1909 = vmatmul.msk.f32.vlgmr.msra.gmra.mxu2 %vm161_vm5, %v1395_v60  ;;  %v1529_v1 = vmul.f32 %v2062_v63, %v2054_v43  ;;  %v1939_v60 = vld [vmem:[%s2858_s12 + $0xd8] sm:$0xff] }
 0xf7c   :  { %1551 = vmatpush.msrb.mxu2 %v1531_v50  ;;  %1484 = vmatpush.msra.mxu3 %v1464_v61  ;;  %v1284_v4 = vpop.permute.xlu0 %1283  ;;  %v1936_v61 = vld [vmem:[%s2858_s12 + $0xc0] sm:$0xff]  ;;  %v1935_v63 = vld [vmem:[%s2858_s12 + $0xb8] sm:$0xff] }
 0xf7d   :  { %1912 = vmatmul.msk.f32.vlgmr.msra.gmra.mxu3 %vm161_vm5, %v1462_v52  ;;  %1738 = vmatpush.msra.mxu0 %v1939_v60  ;;  %v1937_v52 = vld [vmem:[%s2858_s12 + $0xc8] sm:$0xff]  ;;  %v1810_v60 = vld [vmem:[%s2862_s16 + $0x18] sm:$0xff] }
 0xf7e   :  { %1686 = vmatpush.msrb.mxu3 %v1925_v62 }
 0xf7f   :  { %1739 = vmatpush.msra.mxu0 %v1938_v26  ;;  %v1809_v26 = vld [vmem:[%s2862_s16 + $0x10] sm:$0xff] }
 0xf80   :  { %1687 = vmatpush.msrb.mxu3 %v1924_v31 }
 0xf81   :  { %v1280_v3 = vpop.permute.xlu1 %1279  ;;  %1740 = vmatpush.msra.mxu0 %v1937_v52  ;;  %v1979_v52 = vld [vmem:[%s2861_s15] ss:$0 sm:$0xff]  ;;  %s1845_s15 = sshll.u32 %s2115_s22, 4  ;;  %s1846_s15 = int_to_ptr.vmem [resolvable:$true] %s1845_s15 }
 0xf82   :  { %v1287_v25 = vsel %vm443_vm13, %v1286_v2, %v1280_v3  ;;  %1688 = vmatpush.msrb.mxu3 %v1923_v32  ;;  %v1933_v2 = vld [vmem:[%s2858_s12 + $0xa8] sm:$0xff]  ;;  %v1932_v3 = vld [vmem:[%s2858_s12 + $0xa0] sm:$0xff] }
 0xf83   :  { %v1288_v6 = vsel %vm445_vm14, %v1287_v25, %v1284_v4  ;;  %1915 = vmatmul.msk.f32.vlgmr.msrb.gmra.mxu2 %vm161_vm5, %v1529_v1  ;;  %1741 = vmatpush.msra.mxu0 %v1936_v61  ;;  %v1934_v1 = vld [vmem:[%s2858_s12 + $0xb0] sm:$0xff]  ;;  %v1931_v4 = vld [vmem:[%s2858_s12 + $0x98] sm:$0xff] }
 0xf84   :  { %1920 = vmatmul.msk.f32.vlgmr.msra.gmra.mxu1 %vm64_vm0, %v1288_v6  ;;  %v1930_v25 = vld [vmem:[%s2858_s12 + $0x90] sm:$0xff]  ;;  %v1929_v6 = vld [vmem:[%s2858_s12 + $0x88] sm:$0xff] }
 0xf85   :  { %1742 = vmatpush.msra.mxu0 %v1935_v63 }
 0xf87   :  { %1743 = vmatpush.msra.mxu0 %v1934_v1 }
 0xf89   :  { %1744 = vmatpush.msra.mxu0 %v1933_v2 }
 0xf8b   :  { %1745 = vmatpush.msra.mxu0 %v1932_v3 }
 0xf8d   :  { %1746 = vmatpush.msra.mxu0 %v1931_v4 }
 0xf8f   :  { %1747 = vmatpush.msra.mxu0 %v1930_v25 }
 0xf91   :  { %1748 = vmatpush.msra.mxu0 %v1929_v6 }
 0xfe6   :  { %v1352_v49 = vpop.f32.mrf.mxu3 }
 0xffe   :  { %v1419_v7 = vpop.f32.mrf.mxu2 }
 0xfff   :  { %1557 = vrot.lane.b32.xlu2 %v1419_v7, %s2905_s1  ;;  %v1977_v7 = vld [vmem:[%s2857_s11 + $0x1] ss:$0 sm:$0xff] }
0x1000   :  { %v1486_v9 = vpop.f32.mrf.mxu3 }
0x1001   :  { %1561 = vrot.lane.b32.xlu1 %v1486_v9, %s2907_s30  ;;  %v1601_v12 = vpop.f32.mrf.mxu1 }
0x1002   :  { %v1602_v13 = vadd.f32 %v1974_v29, %v1601_v12 }
0x1004   :  { %v2706_v14 = vadd.f32 %v1602_v13, %v2528_v55 }
0x1006   :  { %v1553_v11 = vpop.f32.mrf.mxu2  ;;  %v1611_v41 = vsel %vm64_vm0, %v2706_v14, 0.0 }
0x1007   :  { %1565 = vrot.lane.b32.xlu0 %v1553_v11, %s2906_s20 }
0x1028   :  { %1612 = vadd.xlane.f32.xlu2 %v1611_v41 }
0x1059   :  { %v1558_v15 = vpop.permute.xlu2 %1557 }
0x105a   :  { %v1568_v17 = vsel %vm161_vm5, %v1352_v49, %v1558_v15  ;;  %v1928_v49 = vld [vmem:[%s2858_s12 + $0x80] sm:$0xff] }
0x105b   :  { %1749 = vmatpush.msra.mxu0 %v1928_v49 }
0x1073   :  { %v1562_v16 = vpop.permute.xlu1 %1561 }
0x1074   :  { %v1569_v18 = vsel %vm443_vm13, %v1568_v17, %v1562_v16 }
0x1079   :  { %v1566_v19 = vpop.permute.xlu0 %1565 }
0x107a   :  { %v1570_v20 = vsel %vm445_vm14, %v1569_v18, %v1566_v19 }
0x107b   :  { %1921 = vmatmul.msk.f32.gmra.mxu1 %vm64_vm0, %v1570_v20 }
0x109b   :  { %v1613_v21 = vpop.xlane.xlu2 %1612 }
0x109c   :  { %v1617_v22 = vmul.f32 %v1613_v21, %v2218_v8 }
0x109e   :  { %v1619_v55 = vsub.f32 %v2706_v14, %v1617_v22 }
0x10a0   :  { %v1621_v51 = vmul.f32 %v1619_v55, %v1619_v55 }
0x10a2   :  { %v1623_v23 = vsel %vm64_vm0, %v1621_v51, 0.0 }
0x10a3   :  { %1624 = vadd.xlane.f32.xlu0 %v1623_v23 }
0x10f8   :  { %v1604_v24 = vpop.f32.mrf.mxu1 }
0x10f9   :  { %v1605_v27 = vadd.f32 %v1974_v29, %v1604_v24 }
0x10fb   :  { %v2718_v28 = vadd.f32 %v1605_v27, %v2536_v10  ;;  %v1922_v10 = vld [vmem:[%s2856_s10 + $0x20] sm:$0xff] }
0x10fc   :  { %1689 = vmatpush.msrb.mxu3 %v1922_v10 }
0x10fd   :  { %v1614_v30 = vsel %vm64_vm0, %v2718_v28, 0.0 }
0x10fe   :  { %1615 = vadd.xlane.f32.xlu1 %v1614_v30 }
0x1116   :  { %v1625_v33 = vpop.xlane.xlu0 %1624 }
0x1117   :  { %v1629_v37 = vmul.f32 %v1625_v33, %v2218_v8 }
0x1119   :  { %v1631_v0 = vadd.f32 1e-05, %v1629_v37 }
0x111b   :  { %2063 = vrsqrt.f32 %v1631_v0  ;;  %vm1639_vm7 = vweird.f32 %v1631_v0 }
0x1121   :  { %v2064_v38 = vpop.eup %2063 }
0x1122   :  { %v1634_v40 = vmul.f32 %v2064_v38, %v1631_v0  ;;  %vm1640_vm5 = vweird.f32 %v2064_v38 }
0x1123   :  { %vm1641_vm12 = vmor %vm1639_vm7, %vm1640_vm5 }
0x1124   :  { %v1635_v53 = vmul.f32 %v2064_v38, %v1634_v40 }
0x1126   :  { %v1636_v35 = vmul.f32 0.5, %v1635_v53 }
0x1128   :  { %v1637_v42 = vsub.f32 1.5, %v1636_v35 }
0x112a   :  { %v1638_v43 = vmul.f32 %v2064_v38, %v1637_v42 }
0x112c   :  { %v1642_v45 = vsel %vm1641_vm12, %v2064_v38, %v1638_v43 }
0x112d   :  { %v1653_v36 = vmul.f32 %v1642_v45, %v1619_v55 }
0x112f   :  { %v1656_v39 = vmul.f32 %v2738_v44, %v1653_v36  ;;  %v1769_v36 = vld [vmem:[%s2860_s14 + $0x10] sm:$0xff] }
0x1131   :  { %v1659_v46 = vadd.f32 %v2743_v34, %v1656_v39  ;;  %v1767_v39 = vld [vmem:[%s2860_s14] sm:$0xff] }
0x1133   :  { %1926 = vmatmul.msk.f32.vlgmr.msrb.gmra.mxu3 %vm64_vm0, %v1659_v46 }
0x1171   :  { %v1616_v50 = vpop.xlane.xlu1 %1615 }
0x1172   :  { %v1618_v54 = vmul.f32 %v1616_v50, %v2218_v8 }
0x1174   :  { %v1620_v56 = vsub.f32 %v2718_v28, %v1618_v54 }
0x1176   :  { %v1622_v57 = vmul.f32 %v1620_v56, %v1620_v56 }
0x1178   :  { %v1626_v58 = vsel %vm64_vm0, %v1622_v57, 0.0 }
0x1179   :  { %1627 = vadd.xlane.f32.xlu2 %v1626_v58 }
0x11b6   :  { %v1691_v9 = vpop.f32.mrf.mxu3 }
0x11b7   :  { %v1692_v11 = vadd.f32 %v1977_v7, %v1691_v9 }
0x11b9   :  { %v1697_v29 = vmul.f32 %v1692_v11, %v1692_v11 }
0x11bb   :  { %v1699_v12 = vmul.f32 %v1697_v29, %v1692_v11 }
0x11bd   :  { %v1701_v13 = vmul.f32 0.044715, %v1699_v12 }
0x11bf   :  { %v1703_v41 = vadd.f32 %v1701_v13, %v1692_v11 }
0x11c1   :  { %v1705_v15 = vmul.f32 0.7978846, %v1703_v41 }
0x11c3   :  { %2065 = vtanh.f32 %v1705_v15 }
0x11c9   :  { %v2066_v16 = vpop.eup %2065 }
0x11ca   :  { %v1709_v17 = vadd.f32 1.0, %v2066_v16 }
0x11cc   :  { %v1711_v18 = vmul.f32 0.5, %v1709_v17 }
0x11ce   :  { %v1713_v19 = vmul.f32 %v1711_v18, %v1692_v11  ;;  %v1980_v11 = vld [vmem:[%s2863_s17] ss:$0 sm:$0xff] }
0x11d0   :  { %1750 = vmatmul.f32.vlgmr.msra.gmra.mxu0 %v1713_v19 }
0x11ec   :  { %v1628_v20 = vpop.xlane.xlu2 %1627 }
0x11ed   :  { %v1630_v21 = vmul.f32 %v1628_v20, %v2218_v8 }
0x11ef   :  { %v1632_v22 = vadd.f32 1e-05, %v1630_v21 }
0x11f1   :  { %2067 = vrsqrt.f32 %v1632_v22  ;;  %vm1649_vm14 = vweird.f32 %v1632_v22 }
0x11f7   :  { %v2068_v55 = vpop.eup %2067 }
0x11f8   :  { %v1644_v51 = vmul.f32 %v2068_v55, %v1632_v22  ;;  %vm1650_vm13 = vweird.f32 %v2068_v55 }
0x11f9   :  { %vm1651_vm2 = vmor %vm1649_vm14, %vm1650_vm13 }
0x11fa   :  { %v1645_v23 = vmul.f32 %v2068_v55, %v1644_v51 }
0x11fc   :  { %v1646_v24 = vmul.f32 0.5, %v1645_v23 }
0x11fe   :  { %v1647_v27 = vsub.f32 1.5, %v1646_v24 }
0x1200   :  { %v1648_v30 = vmul.f32 %v2068_v55, %v1647_v27 }
0x1202   :  { %v1652_v62 = vsel %vm1651_vm2, %v2068_v55, %v1648_v30 }
0x1203   :  { %v1654_v31 = vmul.f32 %v1652_v62, %v1620_v56 }
0x1205   :  { %v1657_v32 = vmul.f32 %v2738_v44, %v1654_v31  ;;  %v1770_v44 = vld [vmem:[%s2860_s14 + $0x18] sm:$0xff] }
0x1206   :  { %1790 = vmatpush.msra.mxu2 %v1770_v44 }
0x1207   :  { %v1660_v10 = vadd.f32 %v2743_v34, %v1657_v32  ;;  %v1768_v34 = vld [vmem:[%s2860_s14 + $0x8] sm:$0xff] }
0x1208   :  { %1791 = vmatpush.msra.mxu2 %v1769_v36 }
0x1209   :  { %1927 = vmatmul.msk.f32.gmra.mxu3 %vm64_vm0, %v1660_v10 }
0x120a   :  { %1792 = vmatpush.msra.mxu2 %v1768_v34 }
0x120c   :  { %1793 = vmatpush.msra.mxu2 %v1767_v39 }
0x120e   :  { %1830 = vmatpush.msrb.mxu2 %v1810_v60 }
0x1210   :  { %1831 = vmatpush.msrb.mxu2 %v1809_v26 }
0x124d   :  { %v1751_v46 = vpop.f32.mrf.mxu0 }
0x124e   :  { %v1752_v5 = vadd.f32 %v1978_v47, %v1751_v46 }
0x1250   :  { %v1757_v50 = vadd.f32 %v1752_v5, %v2706_v14  ;;  %v1808_v14 = vld [vmem:[%s2862_s16 + $0x8] sm:$0xff] }
0x1251   :  { %1832 = vmatpush.msrb.mxu2 %v1808_v14 }
0x1252   :  { %v1760_v57 = vrot.slane %v1757_v50, 7 }
0x128c   :  { %v1694_v8 = vpop.f32.mrf.mxu3 }
0x128d   :  { %v1695_v33 = vadd.f32 %v1977_v7, %v1694_v8 }
0x128f   :  { %v1698_v37 = vmul.f32 %v1695_v33, %v1695_v33 }
0x1291   :  { %v1700_v0 = vmul.f32 %v1698_v37, %v1695_v33 }
0x1293   :  { %v1702_v38 = vmul.f32 0.044715, %v1700_v0 }
0x1295   :  { %v1704_v40 = vadd.f32 %v1702_v38, %v1695_v33 }
0x1297   :  { %v1706_v53 = vmul.f32 0.7978846, %v1704_v40 }
0x1299   :  { %2069 = vtanh.f32 %v1706_v53 }
0x129f   :  { %v2070_v35 = vpop.eup %2069 }
0x12a0   :  { %v1710_v42 = vadd.f32 1.0, %v2070_v35 }
0x12a2   :  { %v1712_v43 = vmul.f32 0.5, %v1710_v42 }
0x12a4   :  { %v1714_v45 = vmul.f32 %v1712_v43, %v1695_v33 }
0x12a6   :  { %1753 = vmatmul.f32.gmra.mxu0 %v1714_v45 }
0x1323   :  { %v1754_v48 = vpop.f32.mrf.mxu0 }
0x1324   :  { %v1755_v54 = vadd.f32 %v1978_v47, %v1754_v48 }
0x1326   :  { %v1758_v56 = vadd.f32 %v1755_v54, %v2718_v28  ;;  %v1807_v28 = vld [vmem:[%s2862_s16] sm:$0xff] }
0x1327   :  { %1833 = vmatpush.msrb.mxu2 %v1807_v28 }
0x1328   :  { %v1763_v58 = vrot.slane %v1758_v56, 6 }
0x132a   :  { %v1766_v59 = vsel %vm1765_vm3, %v1760_v57, %v1763_v58 }
0x132b   :  { %1944 = vmatmul.msk.f32.vlgmr.msra.gmra.mxu2 %vm64_vm0, %v1766_v59 }
0x13ae   :  { %v1795_v61 = vpop.f32.mrf.mxu2 }
0x13af   :  { %v1796_v63 = vadd.f32 %v1979_v52, %v1795_v61 }
0x13b1   :  { %v1798_v1 = vmul.f32 %v1796_v63, %v1796_v63 }
0x13b3   :  { %v1799_v2 = vmul.f32 %v1798_v1, %v1796_v63 }
0x13b5   :  { %v1800_v3 = vmul.f32 0.044715, %v1799_v2 }
0x13b7   :  { %v1801_v4 = vadd.f32 %v1800_v3, %v1796_v63 }
0x13b9   :  { %v1802_v25 = vmul.f32 0.7978846, %v1801_v4 }
0x13bb   :  { %2071 = vtanh.f32 %v1802_v25 }
0x13c1   :  { %v2072_v6 = vpop.eup %2071 }
0x13c2   :  { %v1804_v49 = vadd.f32 1.0, %v2072_v6 }
0x13c4   :  { %v1805_v7 = vmul.f32 0.5, %v1804_v49 }
0x13c6   :  { %v1806_v9 = vmul.f32 %v1805_v7, %v1796_v63 }
0x13c8   :  { %1945 = vmatmul.msk.f32.vlgmr.msrb.gmra.mxu2 %vm64_vm0, %v1806_v9 }
0x144b   :  { %v1835_v29 = vpop.f32.mrf.mxu2 }
0x144c   :  { %v1836_v12 = vadd.f32 %v1980_v11, %v1835_v29 }
0x144e   :  { %1839 = vst.msk [vmem:[#allocation2] sm:$0x3] %vm1838_vm4, %v1836_v12 }
0x144f   :  { %1850 = dma.vmem_to_hbm [thread:$0]  %s1846_s15, 32, %s1848_s23, [#allocation3]  }
0x1450   :  { %2097 = dma.done.wait [#allocation3], 32  }
0x1451   :  { %2098 = vsyncadd [#allocation3], 4294967264 }
0x1452   :  { %1855 = vsyncpa [#allocation3], 1 }

</bundles_post_ra>
